<compile_context>
chip_gen: v7x
topology: tpu7x:2x2x1
jax: 0.10.0
libtpu: 0.0.40
codegen_flags: <defaults>
</compile_context>

<pallas_src>
import functools
import math

import jax
import jax.numpy as jnp
import numpy as np
from jax import lax
from jax.experimental import pallas as pl
from jax.experimental.pallas import tpu as pltpu

LANE = 128      # lane width: each gate / feature block padded to this
SUBLANE = 8     # f32 sublane granule: batch rows padded to a multiple of this


def _round_up(x, m):
    return (x + m - 1) // m * m


# ----------------------------------------------------------------------------
# Pallas kernel: GRU recurrence over one time chunk + fused FC head
# ----------------------------------------------------------------------------
def gru_fc_kernel(gi_ref,     # (T_TILE, TB, 3*Hp) f32 : x@W_ih + (b_ih + b_hh[r,z])
                  whh_ref,    # (Hp, 3*Hp) bf16        : gate-padded W_hh.T
                  bhn_ref,    # (1, Hp) f32            : b_hh for the n gate only
                  xnum_ref,   # (TB, Np) f32           : numerical features (lane padded)
                  wfch_ref,   # (1, Hp) f32            : fc weight, hidden part
                  wfcn_ref,   # (1, Np) f32            : fc weight, numerical part
                  bfc_ref,    # (1, 1) f32
                  out_ref,    # (TB, 1) f32
                  h_ref):     # scratch (TB, Hp) f32   : hidden carry across time tiles
    t_tile = pl.program_id(1)
    T_TILE = gi_ref.shape[0]
    Hp = whh_ref.shape[0]

    @pl.when(t_tile == 0)
    def _():
        h_ref[...] = jnp.zeros_like(h_ref)

    whh = whh_ref[...]          # hoisted loads (invariant across the time loop)
    bhn = bhn_ref[...]

    def step(t, h):
        gi = gi_ref[t]                                            # (TB, 3*Hp)
        gh = jnp.dot(h.astype(jnp.bfloat16), whh,
                     preferred_element_type=jnp.float32)          # (TB, 3*Hp)
        r = jax.nn.sigmoid(gi[:, :Hp] + gh[:, :Hp])
        z = jax.nn.sigmoid(gi[:, Hp:2 * Hp] + gh[:, Hp:2 * Hp])
        n = jnp.tanh(gi[:, 2 * Hp:] + r * (gh[:, 2 * Hp:] + bhn))
        return n + z * (h - n)                                    # == (1-z)*n + z*h

    h = lax.fori_loop(0, T_TILE, step, h_ref[...], unroll=True)
    h_ref[...] = h

    @pl.when(t_tile == pl.num_programs(1) - 1)
    def _():
        # fc([h_last, x_numerical]): VPU multiply + row reduce (output is a
        # single lane, so a 1-column MXU matvec would be pure waste).
        # nn.Dropout(0.3) is identity at inference time.
        logits = (jnp.sum(h * wfch_ref[...], axis=-1, keepdims=True)
                  + jnp.sum(xnum_ref[...] * wfcn_ref[...], axis=-1, keepdims=True)
                  + bfc_ref[...])
        out_ref[...] = logits.astype(out_ref.dtype)


# ----------------------------------------------------------------------------
# Wrapper: embedding gather + hoisted input projection + pallas_call plumbing
# ----------------------------------------------------------------------------
@jax.jit
def unified_gru_forward(ids, x_numerical, params):
    B, T = ids.shape
    E = params["embedding"].shape[1]
    H = params["w_hh"].shape[1]
    N = x_numerical.shape[1]
    f32 = jnp.float32

    Hp = _round_up(H, LANE)                 # 32 -> 128
    Np = _round_up(N, LANE)                 # 4  -> 128
    B_pad = _round_up(B, SUBLANE)           # batch padded to sublane granule
    TB = 128 if B_pad % 128 == 0 else SUBLANE
    T_TILE = math.gcd(T, 32)                # static chunk of the time loop

    w_ih, w_hh = params["w_ih"], params["w_hh"]      # (3H, E), (3H, H)
    b_ih, b_hh = params["b_ih"], params["b_hh"]      # (3H,)

    # ---- gate-padded weights: each gate in its own 128-lane group ----------
    def gate_split_pad(w, rows_pad):
        rows = w.shape[1]
        out = jnp.zeros((rows_pad, 3 * Hp), f32)
        for g in range(3):
            out = out.at[:rows, g * Hp:g * Hp + H].set(w[g * H:(g + 1) * H, :].T)
        return out

    wih_pad = gate_split_pad(w_ih, E)                               # (E, 3*Hp)
    whh_pad = gate_split_pad(w_hh, Hp).astype(jnp.bfloat16)         # (Hp, 3*Hp)

    # fold b_hh into the precomputed projection for r and z; the n-gate hidden
    # bias must stay separate (it is multiplied by r inside the cell).
    bias = jnp.zeros((3 * Hp,), f32)
    bias = bias.at[0 * Hp:0 * Hp + H].set(b_ih[:H] + b_hh[:H])
    bias = bias.at[1 * Hp:1 * Hp + H].set(b_ih[H:2 * H] + b_hh[H:2 * H])
    bias = bias.at[2 * Hp:2 * Hp + H].set(b_ih[2 * H:])
    bhn = jnp.zeros((1, Hp), f32).at[0, :H].set(b_hh[2 * H:])

    # ---- embedding gather + hoisted input projection (one big bf16 matmul) --
    # TODO(synk): for large vocab / long T, fuse this gather + projection into a
    # Pallas pass (ids via scalar prefetch) instead of materializing (T,B,E).
    emb = jnp.take(params["embedding"], ids, axis=0)                # (B, T, E)
    x_tbe = jnp.transpose(emb, (1, 0, 2))                           # (T, B, E)
    x_tbe = jnp.pad(x_tbe, ((0, 0), (0, B_pad - B), (0, 0)))
    gi = jnp.dot(x_tbe.reshape(T * B_pad, E).astype(jnp.bfloat16),
                 wih_pad.astype(jnp.bfloat16),
                 preferred_element_type=jnp.float32) + bias[None, :]
    gi = gi.reshape(T, B_pad, 3 * Hp)

    # ---- FC weights split & lane-padded -------------------------------------
    fc_w = params["fc_w"]                                           # (1, H+N)
    wfch = jnp.zeros((1, Hp), f32).at[0, :H].set(fc_w[0, :H])
    wfcn = jnp.zeros((1, Np), f32).at[0, :N].set(fc_w[0, H:])
    bfc = params["fc_b"].reshape(1, 1)
    xnum_pad = jnp.zeros((B_pad, Np), f32).at[:B, :N].set(x_numerical)

    grid = (B_pad // TB, T // T_TILE)
    out = pl.pallas_call(
        gru_fc_kernel,
        out_shape=jax.ShapeDtypeStruct((B_pad, 1), jnp.float32),
        grid_spec=pltpu.PrefetchScalarGridSpec(
            num_scalar_prefetch=0,
            grid=grid,
            in_specs=[
                pl.BlockSpec((T_TILE, TB, 3 * Hp), lambda b, t: (t, b, 0)),
                pl.BlockSpec((Hp, 3 * Hp), lambda b, t: (0, 0)),
                pl.BlockSpec((1, Hp), lambda b, t: (0, 0)),
                pl.BlockSpec((TB, Np), lambda b, t: (b, 0)),
                pl.BlockSpec((1, Hp), lambda b, t: (0, 0)),
                pl.BlockSpec((1, Np), lambda b, t: (0, 0)),
                pl.BlockSpec((1, 1), lambda b, t: (0, 0)),
            ],
            out_specs=pl.BlockSpec((TB, 1), lambda b, t: (b, 0)),
            scratch_shapes=[pltpu.VMEM((TB, Hp), jnp.float32)],
        ),
        compiler_params=pltpu.CompilerParams(
            dimension_semantics=("parallel", "arbitrary"),
            vmem_limit_bytes=32 * 1024 * 1024,
        ),
    )(gi, whh_pad, bhn, xnum_pad, wfch, wfcn, bfc)
    return out[:B]


# ----------------------------------------------------------------------------
# Pure-JAX f32 reference (mirrors torch.nn.GRU + fc semantics) for validation
# ----------------------------------------------------------------------------
def reference_forward(ids, x_numerical, params):
    emb = jnp.take(params["embedding"], ids, axis=0)       # (B, T, E)
    H = params["w_hh"].shape[1]
    w_ih, w_hh = params["w_ih"], params["w_hh"]
    b_ih, b_hh = params["b_ih"], params["b_hh"]

    def step(h, x_t):
        gi = x_t @ w_ih.T + b_ih
        gh = h @ w_hh.T + b_hh
        r = jax.nn.sigmoid(gi[:, :H] + gh[:, :H])
        z = jax.nn.sigmoid(gi[:, H:2 * H] + gh[:, H:2 * H])
        n = jnp.tanh(gi[:, 2 * H:] + r * gh[:, 2 * H:])
        return (1.0 - z) * n + z * h, None

    h0 = jnp.zeros((ids.shape[0], H), jnp.float32)
    h_last, _ = lax.scan(step, h0, jnp.transpose(emb, (1, 0, 2)))
    feat = jnp.concatenate([h_last, x_numerical], axis=1)
    return feat @ params["fc_w"].T + params["fc_b"]


def init_params(key, vocab_size, embedding_dim, hidden_size, numerical_dim):
    ks = jax.random.split(key, 7)
    bound = 1.0 / np.sqrt(hidden_size)
    u = lambda k, shape, b: jax.random.uniform(k, shape, jnp.float32, -b, b)
    return {
        "embedding": jax.random.normal(ks[0], (vocab_size, embedding_dim), jnp.float32),
        "w_ih": u(ks[1], (3 * hidden_size, embedding_dim), bound),
        "w_hh": u(ks[2], (3 * hidden_size, hidden_size), bound),
        "b_ih": u(ks[3], (3 * hidden_size,), bound),
        "b_hh": u(ks[4], (3 * hidden_size,), bound),
        "fc_w": u(ks[5], (1, hidden_size + numerical_dim),
                  1.0 / np.sqrt(hidden_size + numerical_dim)),
        "fc_b": u(ks[6], (1,), 1.0 / np.sqrt(hidden_size + numerical_dim)),
    }


if __name__ == "__main__":
    vocab_size, embedding_dim, hidden_size = 50, 32, 32
    numerical_dim = 4
    batch, seq = 2, 8

    key = jax.random.PRNGKey(0)
    k_ids, k_num, k_par = jax.random.split(key, 3)

    ids = jax.random.randint(k_ids, (batch, seq), 0, vocab_size, dtype=jnp.int32)
    x_numerical = jax.random.normal(k_num, (batch, numerical_dim), jnp.float32)
    params = init_params(k_par, vocab_size, embedding_dim, hidden_size, numerical_dim)

    out = unified_gru_forward(ids, x_numerical, params)
    out = jax.block_until_ready(out)

    ref = reference_forward(ids, x_numerical, params)
    # bf16 MXU operands (kernel) vs f32 reference -> relaxed tolerance.
    np.testing.assert_allclose(np.asarray(out), np.asarray(ref), rtol=3e-2, atol=3e-2)

    print("KERNEL_OK")
</pallas_src>

<mosaic_0001>
module attributes {stable_mosaic.version = 11 : i64} {
  func.func @gru_fc_kernel(%arg0: i32, %arg1: i32, %arg2: memref<8x8x384xf32, #tpu.memory_space<vmem>>, %arg3: memref<128x384xbf16, #tpu.memory_space<vmem>>, %arg4: memref<1x128xf32, #tpu.memory_space<vmem>>, %arg5: memref<8x128xf32, #tpu.memory_space<vmem>>, %arg6: memref<1x128xf32, #tpu.memory_space<vmem>>, %arg7: memref<1x128xf32, #tpu.memory_space<vmem>>, %arg8: memref<1x1xf32, #tpu.memory_space<vmem>>, %arg9: memref<8x1xf32, #tpu.memory_space<vmem>>, %arg10: memref<8x128xf32, #tpu.memory_space<vmem>>) attributes {dimension_semantics = [#tpu.dimension_semantics<parallel>, #tpu.dimension_semantics<arbitrary>], iteration_bounds = array<i64: 1, 1>, scalar_prefetch = 0 : i64, scratch_operands = 1 : i64, tpu.core_type = #tpu.core_type<tc>, window_params = [{transform_indices = @transform_0, window_bounds = array<i64: 8, 8, 384>}, {pipeline_mode = #tpu.pipeline_mode<synchronous>, transform_indices = @transform_1, window_bounds = array<i64: 128, 384>}, {pipeline_mode = #tpu.pipeline_mode<synchronous>, transform_indices = @transform_2, window_bounds = array<i64: 1, 128>}, {transform_indices = @transform_3, window_bounds = array<i64: 8, 128>}, {pipeline_mode = #tpu.pipeline_mode<synchronous>, transform_indices = @transform_4, window_bounds = array<i64: 1, 128>}, {pipeline_mode = #tpu.pipeline_mode<synchronous>, transform_indices = @transform_5, window_bounds = array<i64: 1, 128>}, {pipeline_mode = #tpu.pipeline_mode<synchronous>, transform_indices = @transform_6, window_bounds = array<i64: 1, 1>}, {transform_indices = @transform_7, window_bounds = array<i64: 8, 1>}]} {
    %c0_i32 = arith.constant 0 : i32
    %0 = arith.cmpi eq, %arg1, %c0_i32 : i32
    %1 = arith.extui %0 : i1 to i32
    %c0_i32_0 = arith.constant 0 : i32
    %2 = arith.cmpi ne, %1, %c0_i32_0 : i32
    scf.if %2 {
      %cst_50 = arith.constant 0.000000e+00 : f32
      %258 = vector.broadcast %cst_50 : f32 to vector<8x128xf32>
      %c0_51 = arith.constant 0 : index
      %c0_52 = arith.constant 0 : index
      %259 = vector.load %arg10[%c0_51, %c0_52] : memref<8x128xf32, #tpu.memory_space<vmem>>, vector<8x128xf32>
      tpu.vector_store %arg10[%c0_51, %c0_52], %258 {strides = array<i32>} : memref<8x128xf32, #tpu.memory_space<vmem>>, vector<8x128xf32>,
    } else {
    }
    %c0 = arith.constant 0 : index
    %c0_1 = arith.constant 0 : index
    %3 = vector.load %arg3[%c0, %c0_1] : memref<128x384xbf16, #tpu.memory_space<vmem>>, vector<128x384xbf16>
    %c0_2 = arith.constant 0 : index
    %c0_3 = arith.constant 0 : index
    %4 = vector.load %arg4[%c0_2, %c0_3] : memref<1x128xf32, #tpu.memory_space<vmem>>, vector<1x128xf32>
    %c0_4 = arith.constant 0 : index
    %c0_5 = arith.constant 0 : index
    %5 = vector.load %arg10[%c0_4, %c0_5] : memref<8x128xf32, #tpu.memory_space<vmem>>, vector<8x128xf32>
    %c0_i32_6 = arith.constant 0 : i32
    %6 = arith.index_cast %c0_i32_6 : i32 to index
    %c0_7 = arith.constant 0 : index
    %c0_8 = arith.constant 0 : index
    %7 = vector.load %arg2[%6, %c0_7, %c0_8] : memref<8x8x384xf32, #tpu.memory_space<vmem>>, vector<1x8x384xf32>
    %8 = vector.shape_cast %7 : vector<1x8x384xf32> to vector<8x384xf32>
    %9 = arith.truncf %5 : vector<8x128xf32> to vector<8x128xbf16>
    %cst = arith.constant dense<0.000000e+00> : vector<8x384xf32>
    %10 = tpu.matmul %9, %3, %cst {dimension_numbers = #tpu.dot_dimension_numbers<[1], [0], [0], [1], [0, 0, 1, 1], [], []>} : vector<8x128xbf16>, vector<128x384xbf16>, vector<8x384xf32> -> vector<8x384xf32>
    %11 = vector.extract_strided_slice %8 {offsets = [0, 0], sizes = [8, 128], strides = [1, 1]} : vector<8x384xf32> to vector<8x128xf32>
    %12 = vector.extract_strided_slice %10 {offsets = [0, 0], sizes = [8, 128], strides = [1, 1]} : vector<8x384xf32> to vector<8x128xf32>
    %13 = arith.addf %11, %12 : vector<8x128xf32>
    %14 = arith.negf %13 : vector<8x128xf32>
    %15 = math.exp %14 : vector<8x128xf32>
    %cst_9 = arith.constant 1.000000e+00 : f32
    %16 = vector.broadcast %cst_9 : f32 to vector<8x128xf32>
    %17 = arith.addf %16, %15 : vector<8x128xf32>
    %18 = arith.divf %16, %17 : vector<8x128xf32>
    %19 = vector.extract_strided_slice %8 {offsets = [0, 128], sizes = [8, 128], strides = [1, 1]} : vector<8x384xf32> to vector<8x128xf32>
    %20 = vector.extract_strided_slice %10 {offsets = [0, 128], sizes = [8, 128], strides = [1, 1]} : vector<8x384xf32> to vector<8x128xf32>
    %21 = arith.addf %19, %20 : vector<8x128xf32>
    %22 = arith.negf %21 : vector<8x128xf32>
    %23 = math.exp %22 : vector<8x128xf32>
    %cst_10 = arith.constant 1.000000e+00 : f32
    %24 = vector.broadcast %cst_10 : f32 to vector<8x128xf32>
    %25 = arith.addf %24, %23 : vector<8x128xf32>
    %26 = arith.divf %24, %25 : vector<8x128xf32>
    %27 = vector.extract_strided_slice %8 {offsets = [0, 256], sizes = [8, 128], strides = [1, 1]} : vector<8x384xf32> to vector<8x128xf32>
    %28 = vector.extract_strided_slice %10 {offsets = [0, 256], sizes = [8, 128], strides = [1, 1]} : vector<8x384xf32> to vector<8x128xf32>
    %29 = vector.broadcast %4 : vector<1x128xf32> to vector<8x128xf32>
    %30 = arith.addf %28, %29 : vector<8x128xf32>
    %31 = arith.mulf %18, %30 : vector<8x128xf32>
    %32 = arith.addf %27, %31 : vector<8x128xf32>
    %33 = math.tanh %32 : vector<8x128xf32>
    %34 = arith.subf %5, %33 : vector<8x128xf32>
    %35 = arith.mulf %26, %34 : vector<8x128xf32>
    %36 = arith.addf %33, %35 : vector<8x128xf32>
    %c1_i32 = arith.constant 1 : i32
    %37 = arith.index_cast %c1_i32 : i32 to index
    %c0_11 = arith.constant 0 : index
    %c0_12 = arith.constant 0 : index
    %38 = vector.load %arg2[%37, %c0_11, %c0_12] : memref<8x8x384xf32, #tpu.memory_space<vmem>>, vector<1x8x384xf32>
    %39 = vector.shape_cast %38 : vector<1x8x384xf32> to vector<8x384xf32>
    %40 = arith.truncf %36 : vector<8x128xf32> to vector<8x128xbf16>
    %cst_13 = arith.constant dense<0.000000e+00> : vector<8x384xf32>
    %41 = tpu.matmul %40, %3, %cst_13 {dimension_numbers = #tpu.dot_dimension_numbers<[1], [0], [0], [1], [0, 0, 1, 1], [], []>} : vector<8x128xbf16>, vector<128x384xbf16>, vector<8x384xf32> -> vector<8x384xf32>
    %42 = vector.extract_strided_slice %39 {offsets = [0, 0], sizes = [8, 128], strides = [1, 1]} : vector<8x384xf32> to vector<8x128xf32>
    %43 = vector.extract_strided_slice %41 {offsets = [0, 0], sizes = [8, 128], strides = [1, 1]} : vector<8x384xf32> to vector<8x128xf32>
    %44 = arith.addf %42, %43 : vector<8x128xf32>
    %45 = arith.negf %44 : vector<8x128xf32>
    %46 = math.exp %45 : vector<8x128xf32>
    %cst_14 = arith.constant 1.000000e+00 : f32
    %47 = vector.broadcast %cst_14 : f32 to vector<8x128xf32>
    %48 = arith.addf %47, %46 : vector<8x128xf32>
    %49 = arith.divf %47, %48 : vector<8x128xf32>
    %50 = vector.extract_strided_slice %39 {offsets = [0, 128], sizes = [8, 128], strides = [1, 1]} : vector<8x384xf32> to vector<8x128xf32>
    %51 = vector.extract_strided_slice %41 {offsets = [0, 128], sizes = [8, 128], strides = [1, 1]} : vector<8x384xf32> to vector<8x128xf32>
    %52 = arith.addf %50, %51 : vector<8x128xf32>
    %53 = arith.negf %52 : vector<8x128xf32>
    %54 = math.exp %53 : vector<8x128xf32>
    %cst_15 = arith.constant 1.000000e+00 : f32
    %55 = vector.broadcast %cst_15 : f32 to vector<8x128xf32>
    %56 = arith.addf %55, %54 : vector<8x128xf32>
    %57 = arith.divf %55, %56 : vector<8x128xf32>
    %58 = vector.extract_strided_slice %39 {offsets = [0, 256], sizes = [8, 128], strides = [1, 1]} : vector<8x384xf32> to vector<8x128xf32>
    %59 = vector.extract_strided_slice %41 {offsets = [0, 256], sizes = [8, 128], strides = [1, 1]} : vector<8x384xf32> to vector<8x128xf32>
    %60 = vector.broadcast %4 : vector<1x128xf32> to vector<8x128xf32>
    %61 = arith.addf %59, %60 : vector<8x128xf32>
    %62 = arith.mulf %49, %61 : vector<8x128xf32>
    %63 = arith.addf %58, %62 : vector<8x128xf32>
    %64 = math.tanh %63 : vector<8x128xf32>
    %65 = arith.subf %36, %64 : vector<8x128xf32>
    %66 = arith.mulf %57, %65 : vector<8x128xf32>
    %67 = arith.addf %64, %66 : vector<8x128xf32>
    %c2_i32 = arith.constant 2 : i32
    %68 = arith.index_cast %c2_i32 : i32 to index
    %c0_16 = arith.constant 0 : index
    %c0_17 = arith.constant 0 : index
    %69 = vector.load %arg2[%68, %c0_16, %c0_17] : memref<8x8x384xf32, #tpu.memory_space<vmem>>, vector<1x8x384xf32>
    %70 = vector.shape_cast %69 : vector<1x8x384xf32> to vector<8x384xf32>
    %71 = arith.truncf %67 : vector<8x128xf32> to vector<8x128xbf16>
    %cst_18 = arith.constant dense<0.000000e+00> : vector<8x384xf32>
    %72 = tpu.matmul %71, %3, %cst_18 {dimension_numbers = #tpu.dot_dimension_numbers<[1], [0], [0], [1], [0, 0, 1, 1], [], []>} : vector<8x128xbf16>, vector<128x384xbf16>, vector<8x384xf32> -> vector<8x384xf32>
    %73 = vector.extract_strided_slice %70 {offsets = [0, 0], sizes = [8, 128], strides = [1, 1]} : vector<8x384xf32> to vector<8x128xf32>
    %74 = vector.extract_strided_slice %72 {offsets = [0, 0], sizes = [8, 128], strides = [1, 1]} : vector<8x384xf32> to vector<8x128xf32>
    %75 = arith.addf %73, %74 : vector<8x128xf32>
    %76 = arith.negf %75 : vector<8x128xf32>
    %77 = math.exp %76 : vector<8x128xf32>
    %cst_19 = arith.constant 1.000000e+00 : f32
    %78 = vector.broadcast %cst_19 : f32 to vector<8x128xf32>
    %79 = arith.addf %78, %77 : vector<8x128xf32>
    %80 = arith.divf %78, %79 : vector<8x128xf32>
    %81 = vector.extract_strided_slice %70 {offsets = [0, 128], sizes = [8, 128], strides = [1, 1]} : vector<8x384xf32> to vector<8x128xf32>
    %82 = vector.extract_strided_slice %72 {offsets = [0, 128], sizes = [8, 128], strides = [1, 1]} : vector<8x384xf32> to vector<8x128xf32>
    %83 = arith.addf %81, %82 : vector<8x128xf32>
    %84 = arith.negf %83 : vector<8x128xf32>
    %85 = math.exp %84 : vector<8x128xf32>
    %cst_20 = arith.constant 1.000000e+00 : f32
    %86 = vector.broadcast %cst_20 : f32 to vector<8x128xf32>
    %87 = arith.addf %86, %85 : vector<8x128xf32>
    %88 = arith.divf %86, %87 : vector<8x128xf32>
    %89 = vector.extract_strided_slice %70 {offsets = [0, 256], sizes = [8, 128], strides = [1, 1]} : vector<8x384xf32> to vector<8x128xf32>
    %90 = vector.extract_strided_slice %72 {offsets = [0, 256], sizes = [8, 128], strides = [1, 1]} : vector<8x384xf32> to vector<8x128xf32>
    %91 = vector.broadcast %4 : vector<1x128xf32> to vector<8x128xf32>
    %92 = arith.addf %90, %91 : vector<8x128xf32>
    %93 = arith.mulf %80, %92 : vector<8x128xf32>
    %94 = arith.addf %89, %93 : vector<8x128xf32>
    %95 = math.tanh %94 : vector<8x128xf32>
    %96 = arith.subf %67, %95 : vector<8x128xf32>
    %97 = arith.mulf %88, %96 : vector<8x128xf32>
    %98 = arith.addf %95, %97 : vector<8x128xf32>
    %c3_i32 = arith.constant 3 : i32
    %99 = arith.index_cast %c3_i32 : i32 to index
    %c0_21 = arith.constant 0 : index
    %c0_22 = arith.constant 0 : index
    %100 = vector.load %arg2[%99, %c0_21, %c0_22] : memref<8x8x384xf32, #tpu.memory_space<vmem>>, vector<1x8x384xf32>
    %101 = vector.shape_cast %100 : vector<1x8x384xf32> to vector<8x384xf32>
    %102 = arith.truncf %98 : vector<8x128xf32> to vector<8x128xbf16>
    %cst_23 = arith.constant dense<0.000000e+00> : vector<8x384xf32>
    %103 = tpu.matmul %102, %3, %cst_23 {dimension_numbers = #tpu.dot_dimension_numbers<[1], [0], [0], [1], [0, 0, 1, 1], [], []>} : vector<8x128xbf16>, vector<128x384xbf16>, vector<8x384xf32> -> vector<8x384xf32>
    %104 = vector.extract_strided_slice %101 {offsets = [0, 0], sizes = [8, 128], strides = [1, 1]} : vector<8x384xf32> to vector<8x128xf32>
    %105 = vector.extract_strided_slice %103 {offsets = [0, 0], sizes = [8, 128], strides = [1, 1]} : vector<8x384xf32> to vector<8x128xf32>
    %106 = arith.addf %104, %105 : vector<8x128xf32>
    %107 = arith.negf %106 : vector<8x128xf32>
    %108 = math.exp %107 : vector<8x128xf32>
    %cst_24 = arith.constant 1.000000e+00 : f32
    %109 = vector.broadcast %cst_24 : f32 to vector<8x128xf32>
    %110 = arith.addf %109, %108 : vector<8x128xf32>
    %111 = arith.divf %109, %110 : vector<8x128xf32>
    %112 = vector.extract_strided_slice %101 {offsets = [0, 128], sizes = [8, 128], strides = [1, 1]} : vector<8x384xf32> to vector<8x128xf32>
    %113 = vector.extract_strided_slice %103 {offsets = [0, 128], sizes = [8, 128], strides = [1, 1]} : vector<8x384xf32> to vector<8x128xf32>
    %114 = arith.addf %112, %113 : vector<8x128xf32>
    %115 = arith.negf %114 : vector<8x128xf32>
    %116 = math.exp %115 : vector<8x128xf32>
    %cst_25 = arith.constant 1.000000e+00 : f32
    %117 = vector.broadcast %cst_25 : f32 to vector<8x128xf32>
    %118 = arith.addf %117, %116 : vector<8x128xf32>
    %119 = arith.divf %117, %118 : vector<8x128xf32>
    %120 = vector.extract_strided_slice %101 {offsets = [0, 256], sizes = [8, 128], strides = [1, 1]} : vector<8x384xf32> to vector<8x128xf32>
    %121 = vector.extract_strided_slice %103 {offsets = [0, 256], sizes = [8, 128], strides = [1, 1]} : vector<8x384xf32> to vector<8x128xf32>
    %122 = vector.broadcast %4 : vector<1x128xf32> to vector<8x128xf32>
    %123 = arith.addf %121, %122 : vector<8x128xf32>
    %124 = arith.mulf %111, %123 : vector<8x128xf32>
    %125 = arith.addf %120, %124 : vector<8x128xf32>
    %126 = math.tanh %125 : vector<8x128xf32>
    %127 = arith.subf %98, %126 : vector<8x128xf32>
    %128 = arith.mulf %119, %127 : vector<8x128xf32>
    %129 = arith.addf %126, %128 : vector<8x128xf32>
    %c4_i32 = arith.constant 4 : i32
    %130 = arith.index_cast %c4_i32 : i32 to index
    %c0_26 = arith.constant 0 : index
    %c0_27 = arith.constant 0 : index
    %131 = vector.load %arg2[%130, %c0_26, %c0_27] : memref<8x8x384xf32, #tpu.memory_space<vmem>>, vector<1x8x384xf32>
    %132 = vector.shape_cast %131 : vector<1x8x384xf32> to vector<8x384xf32>
    %133 = arith.truncf %129 : vector<8x128xf32> to vector<8x128xbf16>
    %cst_28 = arith.constant dense<0.000000e+00> : vector<8x384xf32>
    %134 = tpu.matmul %133, %3, %cst_28 {dimension_numbers = #tpu.dot_dimension_numbers<[1], [0], [0], [1], [0, 0, 1, 1], [], []>} : vector<8x128xbf16>, vector<128x384xbf16>, vector<8x384xf32> -> vector<8x384xf32>
    %135 = vector.extract_strided_slice %132 {offsets = [0, 0], sizes = [8, 128], strides = [1, 1]} : vector<8x384xf32> to vector<8x128xf32>
    %136 = vector.extract_strided_slice %134 {offsets = [0, 0], sizes = [8, 128], strides = [1, 1]} : vector<8x384xf32> to vector<8x128xf32>
    %137 = arith.addf %135, %136 : vector<8x128xf32>
    %138 = arith.negf %137 : vector<8x128xf32>
    %139 = math.exp %138 : vector<8x128xf32>
    %cst_29 = arith.constant 1.000000e+00 : f32
    %140 = vector.broadcast %cst_29 : f32 to vector<8x128xf32>
    %141 = arith.addf %140, %139 : vector<8x128xf32>
    %142 = arith.divf %140, %141 : vector<8x128xf32>
    %143 = vector.extract_strided_slice %132 {offsets = [0, 128], sizes = [8, 128], strides = [1, 1]} : vector<8x384xf32> to vector<8x128xf32>
    %144 = vector.extract_strided_slice %134 {offsets = [0, 128], sizes = [8, 128], strides = [1, 1]} : vector<8x384xf32> to vector<8x128xf32>
    %145 = arith.addf %143, %144 : vector<8x128xf32>
    %146 = arith.negf %145 : vector<8x128xf32>
    %147 = math.exp %146 : vector<8x128xf32>
    %cst_30 = arith.constant 1.000000e+00 : f32
    %148 = vector.broadcast %cst_30 : f32 to vector<8x128xf32>
    %149 = arith.addf %148, %147 : vector<8x128xf32>
    %150 = arith.divf %148, %149 : vector<8x128xf32>
    %151 = vector.extract_strided_slice %132 {offsets = [0, 256], sizes = [8, 128], strides = [1, 1]} : vector<8x384xf32> to vector<8x128xf32>
    %152 = vector.extract_strided_slice %134 {offsets = [0, 256], sizes = [8, 128], strides = [1, 1]} : vector<8x384xf32> to vector<8x128xf32>
    %153 = vector.broadcast %4 : vector<1x128xf32> to vector<8x128xf32>
    %154 = arith.addf %152, %153 : vector<8x128xf32>
    %155 = arith.mulf %142, %154 : vector<8x128xf32>
    %156 = arith.addf %151, %155 : vector<8x128xf32>
    %157 = math.tanh %156 : vector<8x128xf32>
    %158 = arith.subf %129, %157 : vector<8x128xf32>
    %159 = arith.mulf %150, %158 : vector<8x128xf32>
    %160 = arith.addf %157, %159 : vector<8x128xf32>
    %c5_i32 = arith.constant 5 : i32
    %161 = arith.index_cast %c5_i32 : i32 to index
    %c0_31 = arith.constant 0 : index
    %c0_32 = arith.constant 0 : index
    %162 = vector.load %arg2[%161, %c0_31, %c0_32] : memref<8x8x384xf32, #tpu.memory_space<vmem>>, vector<1x8x384xf32>
    %163 = vector.shape_cast %162 : vector<1x8x384xf32> to vector<8x384xf32>
    %164 = arith.truncf %160 : vector<8x128xf32> to vector<8x128xbf16>
    %cst_33 = arith.constant dense<0.000000e+00> : vector<8x384xf32>
    %165 = tpu.matmul %164, %3, %cst_33 {dimension_numbers = #tpu.dot_dimension_numbers<[1], [0], [0], [1], [0, 0, 1, 1], [], []>} : vector<8x128xbf16>, vector<128x384xbf16>, vector<8x384xf32> -> vector<8x384xf32>
    %166 = vector.extract_strided_slice %163 {offsets = [0, 0], sizes = [8, 128], strides = [1, 1]} : vector<8x384xf32> to vector<8x128xf32>
    %167 = vector.extract_strided_slice %165 {offsets = [0, 0], sizes = [8, 128], strides = [1, 1]} : vector<8x384xf32> to vector<8x128xf32>
    %168 = arith.addf %166, %167 : vector<8x128xf32>
    %169 = arith.negf %168 : vector<8x128xf32>
    %170 = math.exp %169 : vector<8x128xf32>
    %cst_34 = arith.constant 1.000000e+00 : f32
    %171 = vector.broadcast %cst_34 : f32 to vector<8x128xf32>
    %172 = arith.addf %171, %170 : vector<8x128xf32>
    %173 = arith.divf %171, %172 : vector<8x128xf32>
    %174 = vector.extract_strided_slice %163 {offsets = [0, 128], sizes = [8, 128], strides = [1, 1]} : vector<8x384xf32> to vector<8x128xf32>
    %175 = vector.extract_strided_slice %165 {offsets = [0, 128], sizes = [8, 128], strides = [1, 1]} : vector<8x384xf32> to vector<8x128xf32>
    %176 = arith.addf %174, %175 : vector<8x128xf32>
    %177 = arith.negf %176 : vector<8x128xf32>
    %178 = math.exp %177 : vector<8x128xf32>
    %cst_35 = arith.constant 1.000000e+00 : f32
    %179 = vector.broadcast %cst_35 : f32 to vector<8x128xf32>
    %180 = arith.addf %179, %178 : vector<8x128xf32>
    %181 = arith.divf %179, %180 : vector<8x128xf32>
    %182 = vector.extract_strided_slice %163 {offsets = [0, 256], sizes = [8, 128], strides = [1, 1]} : vector<8x384xf32> to vector<8x128xf32>
    %183 = vector.extract_strided_slice %165 {offsets = [0, 256], sizes = [8, 128], strides = [1, 1]} : vector<8x384xf32> to vector<8x128xf32>
    %184 = vector.broadcast %4 : vector<1x128xf32> to vector<8x128xf32>
    %185 = arith.addf %183, %184 : vector<8x128xf32>
    %186 = arith.mulf %173, %185 : vector<8x128xf32>
    %187 = arith.addf %182, %186 : vector<8x128xf32>
    %188 = math.tanh %187 : vector<8x128xf32>
    %189 = arith.subf %160, %188 : vector<8x128xf32>
    %190 = arith.mulf %181, %189 : vector<8x128xf32>
    %191 = arith.addf %188, %190 : vector<8x128xf32>
    %c6_i32 = arith.constant 6 : i32
    %192 = arith.index_cast %c6_i32 : i32 to index
    %c0_36 = arith.constant 0 : index
    %c0_37 = arith.constant 0 : index
    %193 = vector.load %arg2[%192, %c0_36, %c0_37] : memref<8x8x384xf32, #tpu.memory_space<vmem>>, vector<1x8x384xf32>
    %194 = vector.shape_cast %193 : vector<1x8x384xf32> to vector<8x384xf32>
    %195 = arith.truncf %191 : vector<8x128xf32> to vector<8x128xbf16>
    %cst_38 = arith.constant dense<0.000000e+00> : vector<8x384xf32>
    %196 = tpu.matmul %195, %3, %cst_38 {dimension_numbers = #tpu.dot_dimension_numbers<[1], [0], [0], [1], [0, 0, 1, 1], [], []>} : vector<8x128xbf16>, vector<128x384xbf16>, vector<8x384xf32> -> vector<8x384xf32>
    %197 = vector.extract_strided_slice %194 {offsets = [0, 0], sizes = [8, 128], strides = [1, 1]} : vector<8x384xf32> to vector<8x128xf32>
    %198 = vector.extract_strided_slice %196 {offsets = [0, 0], sizes = [8, 128], strides = [1, 1]} : vector<8x384xf32> to vector<8x128xf32>
    %199 = arith.addf %197, %198 : vector<8x128xf32>
    %200 = arith.negf %199 : vector<8x128xf32>
    %201 = math.exp %200 : vector<8x128xf32>
    %cst_39 = arith.constant 1.000000e+00 : f32
    %202 = vector.broadcast %cst_39 : f32 to vector<8x128xf32>
    %203 = arith.addf %202, %201 : vector<8x128xf32>
    %204 = arith.divf %202, %203 : vector<8x128xf32>
    %205 = vector.extract_strided_slice %194 {offsets = [0, 128], sizes = [8, 128], strides = [1, 1]} : vector<8x384xf32> to vector<8x128xf32>
    %206 = vector.extract_strided_slice %196 {offsets = [0, 128], sizes = [8, 128], strides = [1, 1]} : vector<8x384xf32> to vector<8x128xf32>
    %207 = arith.addf %205, %206 : vector<8x128xf32>
    %208 = arith.negf %207 : vector<8x128xf32>
    %209 = math.exp %208 : vector<8x128xf32>
    %cst_40 = arith.constant 1.000000e+00 : f32
    %210 = vector.broadcast %cst_40 : f32 to vector<8x128xf32>
    %211 = arith.addf %210, %209 : vector<8x128xf32>
    %212 = arith.divf %210, %211 : vector<8x128xf32>
    %213 = vector.extract_strided_slice %194 {offsets = [0, 256], sizes = [8, 128], strides = [1, 1]} : vector<8x384xf32> to vector<8x128xf32>
    %214 = vector.extract_strided_slice %196 {offsets = [0, 256], sizes = [8, 128], strides = [1, 1]} : vector<8x384xf32> to vector<8x128xf32>
    %215 = vector.broadcast %4 : vector<1x128xf32> to vector<8x128xf32>
    %216 = arith.addf %214, %215 : vector<8x128xf32>
    %217 = arith.mulf %204, %216 : vector<8x128xf32>
    %218 = arith.addf %213, %217 : vector<8x128xf32>
    %219 = math.tanh %218 : vector<8x128xf32>
    %220 = arith.subf %191, %219 : vector<8x128xf32>
    %221 = arith.mulf %212, %220 : vector<8x128xf32>
    %222 = arith.addf %219, %221 : vector<8x128xf32>
    %c7_i32 = arith.constant 7 : i32
    %223 = arith.index_cast %c7_i32 : i32 to index
    %c0_41 = arith.constant 0 : index
    %c0_42 = arith.constant 0 : index
    %224 = vector.load %arg2[%223, %c0_41, %c0_42] : memref<8x8x384xf32, #tpu.memory_space<vmem>>, vector<1x8x384xf32>
    %225 = vector.shape_cast %224 : vector<1x8x384xf32> to vector<8x384xf32>
    %226 = arith.truncf %222 : vector<8x128xf32> to vector<8x128xbf16>
    %cst_43 = arith.constant dense<0.000000e+00> : vector<8x384xf32>
    %227 = tpu.matmul %226, %3, %cst_43 {dimension_numbers = #tpu.dot_dimension_numbers<[1], [0], [0], [1], [0, 0, 1, 1], [], []>} : vector<8x128xbf16>, vector<128x384xbf16>, vector<8x384xf32> -> vector<8x384xf32>
    %228 = vector.extract_strided_slice %225 {offsets = [0, 0], sizes = [8, 128], strides = [1, 1]} : vector<8x384xf32> to vector<8x128xf32>
    %229 = vector.extract_strided_slice %227 {offsets = [0, 0], sizes = [8, 128], strides = [1, 1]} : vector<8x384xf32> to vector<8x128xf32>
    %230 = arith.addf %228, %229 : vector<8x128xf32>
    %231 = arith.negf %230 : vector<8x128xf32>
    %232 = math.exp %231 : vector<8x128xf32>
    %cst_44 = arith.constant 1.000000e+00 : f32
    %233 = vector.broadcast %cst_44 : f32 to vector<8x128xf32>
    %234 = arith.addf %233, %232 : vector<8x128xf32>
    %235 = arith.divf %233, %234 : vector<8x128xf32>
    %236 = vector.extract_strided_slice %225 {offsets = [0, 128], sizes = [8, 128], strides = [1, 1]} : vector<8x384xf32> to vector<8x128xf32>
    %237 = vector.extract_strided_slice %227 {offsets = [0, 128], sizes = [8, 128], strides = [1, 1]} : vector<8x384xf32> to vector<8x128xf32>
    %238 = arith.addf %236, %237 : vector<8x128xf32>
    %239 = arith.negf %238 : vector<8x128xf32>
    %240 = math.exp %239 : vector<8x128xf32>
    %cst_45 = arith.constant 1.000000e+00 : f32
    %241 = vector.broadcast %cst_45 : f32 to vector<8x128xf32>
    %242 = arith.addf %241, %240 : vector<8x128xf32>
    %243 = arith.divf %241, %242 : vector<8x128xf32>
    %244 = vector.extract_strided_slice %225 {offsets = [0, 256], sizes = [8, 128], strides = [1, 1]} : vector<8x384xf32> to vector<8x128xf32>
    %245 = vector.extract_strided_slice %227 {offsets = [0, 256], sizes = [8, 128], strides = [1, 1]} : vector<8x384xf32> to vector<8x128xf32>
    %246 = vector.broadcast %4 : vector<1x128xf32> to vector<8x128xf32>
    %247 = arith.addf %245, %246 : vector<8x128xf32>
    %248 = arith.mulf %235, %247 : vector<8x128xf32>
    %249 = arith.addf %244, %248 : vector<8x128xf32>
    %250 = math.tanh %249 : vector<8x128xf32>
    %251 = arith.subf %222, %250 : vector<8x128xf32>
    %252 = arith.mulf %243, %251 : vector<8x128xf32>
    %253 = arith.addf %250, %252 : vector<8x128xf32>
    %c8_i32 = arith.constant 8 : i32
    %c0_46 = arith.constant 0 : index
    %c0_47 = arith.constant 0 : index
    %254 = vector.load %arg10[%c0_46, %c0_47] : memref<8x128xf32, #tpu.memory_space<vmem>>, vector<8x128xf32>
    tpu.vector_store %arg10[%c0_46, %c0_47], %253 {strides = array<i32>} : memref<8x128xf32, #tpu.memory_space<vmem>>, vector<8x128xf32>,
    %c0_i32_48 = arith.constant 0 : i32
    %255 = arith.cmpi eq, %arg1, %c0_i32_48 : i32
    %256 = arith.extui %255 : i1 to i32
    %c0_i32_49 = arith.constant 0 : i32
    %257 = arith.cmpi ne, %256, %c0_i32_49 : i32
    scf.if %257 {
      %c0_50 = arith.constant 0 : index
      %c0_51 = arith.constant 0 : index
      %258 = vector.load %arg6[%c0_50, %c0_51] : memref<1x128xf32, #tpu.memory_space<vmem>>, vector<1x128xf32>
      %259 = vector.broadcast %258 : vector<1x128xf32> to vector<8x128xf32>
      %260 = arith.mulf %253, %259 : vector<8x128xf32>
      %cst_52 = arith.constant dense<0.000000e+00> : vector<8xf32>
      %261 = vector.multi_reduction <add>, %260, %cst_52 [1] : vector<8x128xf32> to vector<8xf32>
      %262 = vector.shape_cast %261 : vector<8xf32> to vector<8x1xf32>
      %c0_53 = arith.constant 0 : index
      %c0_54 = arith.constant 0 : index
      %263 = vector.load %arg5[%c0_53, %c0_54] : memref<8x128xf32, #tpu.memory_space<vmem>>, vector<8x128xf32>
      %c0_55 = arith.constant 0 : index
      %c0_56 = arith.constant 0 : index
      %264 = vector.load %arg7[%c0_55, %c0_56] : memref<1x128xf32, #tpu.memory_space<vmem>>, vector<1x128xf32>
      %265 = vector.broadcast %264 : vector<1x128xf32> to vector<8x128xf32>
      %266 = arith.mulf %263, %265 : vector<8x128xf32>
      %cst_57 = arith.constant dense<0.000000e+00> : vector<8xf32>
      %267 = vector.multi_reduction <add>, %266, %cst_57 [1] : vector<8x128xf32> to vector<8xf32>
      %268 = vector.shape_cast %267 : vector<8xf32> to vector<8x1xf32>
      %269 = arith.addf %262, %268 : vector<8x1xf32>
      %c0_58 = arith.constant 0 : index
      %c0_59 = arith.constant 0 : index
      %270 = vector.load %arg8[%c0_58, %c0_59] : memref<1x1xf32, #tpu.memory_space<vmem>>, vector<1x1xf32>
      %271 = vector.broadcast %270 : vector<1x1xf32> to vector<8x1xf32>
      %272 = arith.addf %269, %271 : vector<8x1xf32>
      %c0_60 = arith.constant 0 : index
      %c0_61 = arith.constant 0 : index
      %273 = vector.load %arg9[%c0_60, %c0_61] : memref<8x1xf32, #tpu.memory_space<vmem>>, vector<8x1xf32>
      tpu.vector_store %arg9[%c0_60, %c0_61], %272 {strides = array<i32>} : memref<8x1xf32, #tpu.memory_space<vmem>>, vector<8x1xf32>,
    } else {
    }
    return
  }
  func.func @transform_0(%arg0: i32, %arg1: i32) -> (i32, i32, i32) {
    %c0_i32 = arith.constant 0 : i32
    %c0_i32_0 = arith.constant 0 : i32
    return %arg1, %arg0, %c0_i32 : i32, i32, i32
  }
  func.func @transform_1(%arg0: i32, %arg1: i32) -> (i32, i32) {
    %c0_i32 = arith.constant 0 : i32
    %c0_i32_0 = arith.constant 0 : i32
    %c0_i32_1 = arith.constant 0 : i32
    return %c0_i32, %c0_i32_0 : i32, i32
  }
  func.func @transform_2(%arg0: i32, %arg1: i32) -> (i32, i32) {
    %c0_i32 = arith.constant 0 : i32
    %c0_i32_0 = arith.constant 0 : i32
    %c0_i32_1 = arith.constant 0 : i32
    return %c0_i32, %c0_i32_0 : i32, i32
  }
  func.func @transform_3(%arg0: i32, %arg1: i32) -> (i32, i32) {
    %c0_i32 = arith.constant 0 : i32
    %c0_i32_0 = arith.constant 0 : i32
    return %arg0, %c0_i32 : i32, i32
  }
  func.func @transform_4(%arg0: i32, %arg1: i32) -> (i32, i32) {
    %c0_i32 = arith.constant 0 : i32
    %c0_i32_0 = arith.constant 0 : i32
    %c0_i32_1 = arith.constant 0 : i32
    return %c0_i32, %c0_i32_0 : i32, i32
  }
  func.func @transform_5(%arg0: i32, %arg1: i32) -> (i32, i32) {
    %c0_i32 = arith.constant 0 : i32
    %c0_i32_0 = arith.constant 0 : i32
    %c0_i32_1 = arith.constant 0 : i32
    return %c0_i32, %c0_i32_0 : i32, i32
  }
  func.func @transform_6(%arg0: i32, %arg1: i32) -> (i32, i32) {
    %c0_i32 = arith.constant 0 : i32
    %c0_i32_0 = arith.constant 0 : i32
    %c0_i32_1 = arith.constant 0 : i32
    return %c0_i32, %c0_i32_0 : i32, i32
  }
  func.func @transform_7(%arg0: i32, %arg1: i32) -> (i32, i32) {
    %c0_i32 = arith.constant 0 : i32
    %c0_i32_0 = arith.constant 0 : i32
    return %arg0, %c0_i32 : i32, i32
  }
}

</mosaic_0001>

<bundles_post_ra>
// kernel: unified_gru_forward.1
= control target key start
LH: loop header
LB: loop body
LE: loop exit
PB: predicated region body
PF: predicated region fallthrough
CT: control target
= control target key end

     0   :  { %v1511_v1 = vmov 0.0   ;;  %v1512_v2 = vmov 0   ;;  %vm1513_vm0 = vmmov 0   ;;  %v1514_v25 = vmov 0.0|0.0   ;;  %s2087_s1 = inlined_call_operand.vmem [shape: bf16[128,384], index: 1, kind: input, shape index: {}]   ;;  %s2088_s0 = inlined_call_operand.vmem [shape: f32[8,8,384], index: 0, kind: input, shape index: {}]   ;;  %s2089_s2 = inlined_call_operand.vmem [shape: f32[1,128], index: 2, kind: input, shape index: {}]   ;;  %s2090_s4 = inlined_call_operand.vmem [shape: f32[1,128], index: 4, kind: input, shape index: {}]   ;;  %s2091_s3 = inlined_call_operand.vmem [shape: f32[8,128], index: 3, kind: input, shape index: {}]   ;;  %s2092_s5 = inlined_call_operand.vmem [shape: f32[1,128], index: 5, kind: input, shape index: {}]   ;;  %s2093_s6 = inlined_call_operand.<no memory space> [shape: f32[1,1], index: 6, kind: input, shape index: {}]   ;;  %s2094_s7 = inlined_call_operand.vmem [shape: f32[8,1], index: 7, kind: output, shape index: {}]  }
   0x1   :  { %v1558_v0 = vld [vmem:[%s2087_s1 + $0x4] ss:$12 sps:$4 sm:$0xff]   ;;  %1234 = vmatprep.subr.bf16.mxu1 %v1511_v1  ;;  %232 = vmatprep.mubr.bf16.mxu0 %v1512_v2  ;;  %v1565_v3 = vld [vmem:[%s2087_s1] ss:$12 sps:$4 sm:$0xff]   ;;  %v1573_v4 = vld [vmem:[%s2087_s1 + $0x1c] ss:$12 sps:$4 sm:$0xff]  }
   0x2   :  { %1250 = vmatprep.mubr.msk.bf16.mxu1 %vm1513_vm0, %v1511_v1  ;;  %200 = vmatprep.subr.bf16.mxu0 %v1558_v0  ;;  %v1579_v5 = vld [vmem:[%s2087_s1 + $0x18] ss:$12 sps:$4 sm:$0xff]   ;;  %v1585_v6 = vld [vmem:[%s2087_s1 + $0x34] ss:$12 sps:$4 sm:$0xff]   ;;  %v1591_v7 = vld [vmem:[%s2087_s1 + $0x30] ss:$12 sps:$4 sm:$0xff]  }
   0x3   :  { %201 = vmatpush1.bf16.msra.mxu0 %v1565_v3  ;;  %v1597_v8 = vld [vmem:[%s2087_s1 + $0x4c] ss:$12 sps:$4 sm:$0xff]   ;;  %v1602_v9 = vld [vmem:[%s2087_s1 + $0x8] ss:$12 sps:$4 sm:$0xff]   ;;  %v1615_v11 = vld [vmem:[%s2087_s1 + $0x64] ss:$12 sps:$4 sm:$0xff]  }
   0x4   :  { %202 = vmatprep.subr.bf16.mxu0 %v1573_v4  ;;  %v1608_v10 = vld [vmem:[%s2087_s1 + $0x48] ss:$12 sps:$4 sm:$0xff]   ;;  %1235 = vmatpush3.bf16.msra.mxu1 %v1602_v9  ;;  %v1621_v12 = vld [vmem:[%s2087_s1 + $0x20] ss:$12 sps:$4 sm:$0xff]   ;;  %v1633_v14 = vld [vmem:[%s2087_s1 + $0x38] ss:$12 sps:$4 sm:$0xff]  }
   0x5   :  { %1236 = vmatprep.subr.bf16.mxu1 %v1511_v1  ;;  %v1626_v13 = vld [vmem:[%s2087_s1 + $0x60] ss:$12 sps:$4 sm:$0xff]   ;;  %v1639_v15 = vld [vmem:[%s2087_s1 + $0x7c] ss:$12 sps:$4 sm:$0xff]   ;;  %v1646_v16 = vld [vmem:[%s2087_s1 + $0x78] ss:$12 sps:$4 sm:$0xff]  }
   0x6   :  { %v1652_v17 = vld [vmem:[%s2087_s1 + $0x50] ss:$12 sps:$4 sm:$0xff]   ;;  %v1658_v18 = vld [vmem:[%s2087_s1 + $0x94] ss:$12 sps:$4 sm:$0xff]   ;;  %v1677_v21 = vld [vmem:[%s2087_s1 + $0xac] ss:$12 sps:$4 sm:$0xff]  }
   0x7   :  { %203 = vmatpush1.bf16.msra.mxu0 %v1579_v5  ;;  %v1665_v19 = vld [vmem:[%s2087_s1 + $0x90] ss:$12 sps:$4 sm:$0xff]   ;;  %v1671_v20 = vld [vmem:[%s2087_s1 + $0x68] ss:$12 sps:$4 sm:$0xff]   ;;  %v1690_v23 = vld [vmem:[%s2087_s1 + $0x80] ss:$12 sps:$4 sm:$0xff]  }
   0x8   :  { %204 = vmatprep.subr.bf16.mxu0 %v1585_v6  ;;  %1237 = vmatpush3.bf16.msra.mxu1 %v1621_v12  ;;  %v1684_v22 = vld [vmem:[%s2087_s1 + $0xa8] ss:$12 sps:$4 sm:$0xff]   ;;  %v1699_v24 = vld [vmem:[%s2087_s1 + $0x98] ss:$12 sps:$4 sm:$0xff]   ;;  %v1707_v26 = vld [vmem:[%s2087_s1 + $0xb0] ss:$12 sps:$4 sm:$0xff]  }
   0x9   :  { %1238 = vmatprep.subr.bf16.mxu1 %v1511_v1  ;;  %v68_v27 = vld [vmem:[%s2088_s0] sm:$0xff]  ;;  %v69_v34 = vld [vmem:[%s2088_s0 + $0x8] sm:$0xff]  ;;  %v70_v47 = vld [vmem:[%s2088_s0 + $0x10] sm:$0xff]  ;;  %vm1091_vm1 = vcmask 7168  }
   0xa   :  { %v1756_v43 = vld [vmem:[%s2089_s2] ss:$0 sm:$0xff]  ;;  %v1124_v57 = vld [vmem:[%s2088_s0 + $0x18] sm:$0xff] }
   0xb   :  { %205 = vmatpush1.bf16.msra.mxu0 %v1591_v7 }
   0xc   :  { %206 = vmatprep.subr.bf16.mxu0 %v1597_v8  ;;  %1239 = vmatpush3.bf16.msra.mxu1 %v1633_v14 }
   0xd   :  { %1240 = vmatprep.subr.bf16.mxu1 %v1511_v1 }
   0xf   :  { %207 = vmatpush1.bf16.msra.mxu0 %v1608_v10 }
  0x10   :  { %208 = vmatprep.subr.bf16.mxu0 %v1615_v11  ;;  %1241 = vmatpush3.bf16.msra.mxu1 %v1652_v17 }
  0x11   :  { %1242 = vmatprep.subr.bf16.mxu1 %v1511_v1 }
  0x13   :  { %209 = vmatpush1.bf16.msra.mxu0 %v1626_v13 }
  0x14   :  { %210 = vmatprep.subr.bf16.mxu0 %v1639_v15  ;;  %1243 = vmatpush3.bf16.msra.mxu1 %v1671_v20 }
  0x15   :  { %1244 = vmatprep.subr.bf16.mxu1 %v1511_v1 }
  0x17   :  { %211 = vmatpush1.bf16.msra.mxu0 %v1646_v16 }
  0x18   :  { %212 = vmatprep.subr.bf16.mxu0 %v1658_v18  ;;  %1245 = vmatpush3.bf16.msra.mxu1 %v1690_v23 }
  0x19   :  { %1246 = vmatprep.subr.bf16.mxu1 %v1511_v1 }
  0x1b   :  { %213 = vmatpush1.bf16.msra.mxu0 %v1665_v19 }
  0x1c   :  { %214 = vmatprep.subr.bf16.mxu0 %v1677_v21  ;;  %1247 = vmatpush3.bf16.msra.mxu1 %v1699_v24 }
  0x1d   :  { %1248 = vmatprep.subr.bf16.mxu1 %v1511_v1 }
  0x1f   :  { %215 = vmatpush1.bf16.msra.mxu0 %v1684_v22 }
  0x20   :  { %313 = vmatprep.subr.bf16.mxu0 %v1558_v0  ;;  %1249 = vmatpush3.bf16.msra.mxu1 %v1707_v26 }
  0x21   :  { %1254 = vmatprep.subr.bf16.mxu1 %v1511_v1 }
  0x22   :  { %233 = vmatmul.mubr.bf16.vlgmr.msra.gmra.mrb[0].mxu0 %v1514_v25 }
  0x23   :  { %314 = vmatpush1.bf16.msra.mxu0 %v1565_v3  ;;  %345 = vmatprep.mubr.bf16.mxu0 %v1512_v2 }
  0x24   :  { %315 = vmatprep.subr.bf16.mxu0 %v1573_v4  ;;  %1251 = vmatmul.mubr.bf16.vlgmr.msra.gmra.mrb[0].mxu1 %v1514_v25 }
  0x25   :  { %1255 = vmatpush3.bf16.msra.mxu1 %v1602_v9  ;;  %1270 = vmatprep.mubr.msk.bf16.mxu1 %vm1513_vm0, %v1511_v1 }
  0x26   :  { %1256 = vmatprep.subr.bf16.mxu1 %v1511_v1 }
  0x27   :  { %316 = vmatpush1.bf16.msra.mxu0 %v1579_v5 }
  0x28   :  { %317 = vmatprep.subr.bf16.mxu0 %v1585_v6 }
  0x29   :  { %1257 = vmatpush3.bf16.msra.mxu1 %v1621_v12 }
  0x2a   :  { %1258 = vmatprep.subr.bf16.mxu1 %v1511_v1 }
  0x2b   :  { %318 = vmatpush1.bf16.msra.mxu0 %v1591_v7 }
  0x2c   :  { %319 = vmatprep.subr.bf16.mxu0 %v1597_v8 }
  0x2d   :  { %1259 = vmatpush3.bf16.msra.mxu1 %v1633_v14 }
  0x2e   :  { %1260 = vmatprep.subr.bf16.mxu1 %v1511_v1 }
  0x2f   :  { %320 = vmatpush1.bf16.msra.mxu0 %v1608_v10 }
  0x30   :  { %321 = vmatprep.subr.bf16.mxu0 %v1615_v11 }
  0x31   :  { %1261 = vmatpush3.bf16.msra.mxu1 %v1652_v17 }
  0x32   :  { %1262 = vmatprep.subr.bf16.mxu1 %v1511_v1 }
  0x33   :  { %322 = vmatpush1.bf16.msra.mxu0 %v1626_v13 }
  0x34   :  { %323 = vmatprep.subr.bf16.mxu0 %v1639_v15 }
  0x35   :  { %1263 = vmatpush3.bf16.msra.mxu1 %v1671_v20 }
  0x36   :  { %1264 = vmatprep.subr.bf16.mxu1 %v1511_v1 }
  0x37   :  { %324 = vmatpush1.bf16.msra.mxu0 %v1646_v16 }
  0x38   :  { %325 = vmatprep.subr.bf16.mxu0 %v1658_v18 }
  0x39   :  { %1265 = vmatpush3.bf16.msra.mxu1 %v1690_v23 }
  0x3a   :  { %1266 = vmatprep.subr.bf16.mxu1 %v1511_v1 }
  0x3b   :  { %326 = vmatpush1.bf16.msra.mxu0 %v1665_v19 }
  0x3c   :  { %327 = vmatprep.subr.bf16.mxu0 %v1677_v21 }
  0x3d   :  { %1267 = vmatpush3.bf16.msra.mxu1 %v1699_v24 }
  0x3e   :  { %1268 = vmatprep.subr.bf16.mxu1 %v1511_v1 }
  0x3f   :  { %328 = vmatpush1.bf16.msra.mxu0 %v1684_v22 }
  0x40   :  { %420 = vmatprep.subr.bf16.mxu0 %v1558_v0 }
  0x41   :  { %1269 = vmatpush3.bf16.msra.mxu1 %v1707_v26 }
  0x42   :  { %1274 = vmatprep.subr.bf16.mxu1 %v1511_v1 }
  0xf5   :  { %v234_v28 = vpop.f32.mrb[0].mxu0 }
  0xf6   :  { %v281_v29 = vadd.f32 %v234_v28, %v68_v27  ;;  %v236_v30 = vpop.f32.mrb[1].mxu0 }
  0xf7   :  { %v238_v31 = vpop.f32.mrb[2].mxu0  ;;  %v275_v35 = vpop.f32.mrb[0].mxu1  ;;  %v288_v36 = vadd.f32 %v236_v30, %v69_v34  ;;  %v1125_v30 = vld [vmem:[%s2088_s0 + $0x20] sm:$0xff] }
  0xf8   :  { %v1121_v32 = vmul.f32 -1.442695, %v281_v29  ;;  %v239_v33 = vpop.f32.mrb[3].mxu0  ;;  %v1252_v37 = vpop.f32.mrb[1].mxu1  ;;  %v301_v44 = vadd.f32 %v1756_v43, %v275_v35 }
  0xf9   :  { %v278_v38 = vpop.f32.mrb[2].mxu1  ;;  %v1122_v40 = vmul.f32 -1.442695, %v288_v36 }
  0xfa   :  { %1430 = vpow2.f32 %v1121_v32  ;;  %v1253_v39 = vpop.f32.mrb[3].mxu1  ;;  %v1126_v38 = vld [vmem:[%s2088_s0 + $0x28] sm:$0xff] }
  0xfb   :  { %1432 = vpow2.f32 %v1122_v40 }
 0x104   :  { %v1431_v41 = vpop.eup %1430 }
 0x105   :  { %v285_v42 = vadd.f32 1.0, %v1431_v41  ;;  %v1433_v45 = vpop.eup %1432 }
 0x106   :  { %v292_v49 = vadd.f32 1.0, %v1433_v45 }
 0x107   :  { %1434 = vrcp.f32 %v285_v42 }
 0x111   :  { %v1435_v46 = vpop.eup %1434 }
 0x112   :  { %v302_v48 = vmul.f32 %v1435_v46, %v301_v44 }
 0x114   :  { %v303_v50 = vadd.f32 %v302_v48, %v70_v47 }
 0x116   :  { %1436 = vtanh.f32 %v303_v50 }
 0x117   :  { %1438 = vrcp.f32 %v292_v49  ;;  %v1129_v49 = vld [vmem:[%s2088_s0 + $0x30] sm:$0xff] }
 0x120   :  { %v1437_v51 = vpop.eup %1436 }
 0x121   :  { %v305_v52 = vsub.f32 0.0, %v1437_v51  ;;  %v1439_v53 = vpop.eup %1438 }
 0x123   :  { %v306_v54 = vmul.f32 %v1439_v53, %v305_v52 }
 0x125   :  { %v1762_v55 = vadd.f32 %v1437_v51, %v306_v54 }
 0x127   :  { %v312_v56 = vpack.c.bf16 %v1762_v55, %v1762_v55 }
 0x129   :  { %346 = vmatmul.mubr.bf16.vlgmr.msra.gmra.mrb[4].mxu0 %v312_v56  ;;  %1271 = vmatmul.mubr.bf16.vlgmr.msra.gmra.mrb[4].mxu1 %v312_v56 }
 0x12a   :  { %421 = vmatpush1.bf16.msra.mxu0 %v1565_v3  ;;  %1275 = vmatpush3.bf16.msra.mxu1 %v1602_v9 }
 0x12b   :  { %422 = vmatprep.subr.bf16.mxu0 %v1573_v4  ;;  %1276 = vmatprep.subr.bf16.mxu1 %v1511_v1 }
 0x12c   :  { %452 = vmatprep.mubr.bf16.mxu0 %v1512_v2  ;;  %1290 = vmatprep.mubr.msk.bf16.mxu1 %vm1513_vm0, %v1511_v1 }
 0x12e   :  { %423 = vmatpush1.bf16.msra.mxu0 %v1579_v5  ;;  %1277 = vmatpush3.bf16.msra.mxu1 %v1621_v12 }
 0x12f   :  { %424 = vmatprep.subr.bf16.mxu0 %v1585_v6  ;;  %1278 = vmatprep.subr.bf16.mxu1 %v1511_v1 }
 0x132   :  { %425 = vmatpush1.bf16.msra.mxu0 %v1591_v7  ;;  %1279 = vmatpush3.bf16.msra.mxu1 %v1633_v14 }
 0x133   :  { %426 = vmatprep.subr.bf16.mxu0 %v1597_v8  ;;  %1280 = vmatprep.subr.bf16.mxu1 %v1511_v1 }
 0x136   :  { %427 = vmatpush1.bf16.msra.mxu0 %v1608_v10  ;;  %1281 = vmatpush3.bf16.msra.mxu1 %v1652_v17 }
 0x137   :  { %428 = vmatprep.subr.bf16.mxu0 %v1615_v11  ;;  %1282 = vmatprep.subr.bf16.mxu1 %v1511_v1 }
 0x13a   :  { %429 = vmatpush1.bf16.msra.mxu0 %v1626_v13  ;;  %1283 = vmatpush3.bf16.msra.mxu1 %v1671_v20 }
 0x13b   :  { %430 = vmatprep.subr.bf16.mxu0 %v1639_v15  ;;  %1284 = vmatprep.subr.bf16.mxu1 %v1511_v1 }
 0x13e   :  { %431 = vmatpush1.bf16.msra.mxu0 %v1646_v16  ;;  %1285 = vmatpush3.bf16.msra.mxu1 %v1690_v23 }
 0x13f   :  { %432 = vmatprep.subr.bf16.mxu0 %v1658_v18  ;;  %1286 = vmatprep.subr.bf16.mxu1 %v1511_v1 }
 0x142   :  { %433 = vmatpush1.bf16.msra.mxu0 %v1665_v19  ;;  %1287 = vmatpush3.bf16.msra.mxu1 %v1699_v24 }
 0x143   :  { %434 = vmatprep.subr.bf16.mxu0 %v1677_v21  ;;  %1288 = vmatprep.subr.bf16.mxu1 %v1511_v1 }
 0x146   :  { %435 = vmatpush1.bf16.msra.mxu0 %v1684_v22  ;;  %1289 = vmatpush3.bf16.msra.mxu1 %v1707_v26 }
 0x147   :  { %527 = vmatprep.subr.bf16.mxu0 %v1558_v0  ;;  %1294 = vmatprep.subr.bf16.mxu1 %v1511_v1 }
 0x1fc   :  { %v347_v58 = vpop.f32.mrb[4].mxu0  ;;  %v388_v59 = vpop.f32.mrb[4].mxu1 }
 0x1fd   :  { %v394_v60 = vadd.f32 %v1124_v57, %v347_v58  ;;  %v349_v61 = vpop.f32.mrb[5].mxu0  ;;  %v1272_v62 = vpop.f32.mrb[5].mxu1  ;;  %v408_v36 = vadd.f32 %v1756_v43, %v388_v59 }
 0x1fe   :  { %v351_v63 = vpop.f32.mrb[6].mxu0  ;;  %v391_v25 = vpop.f32.mrb[6].mxu1  ;;  %v401_v31 = vadd.f32 %v1125_v30, %v349_v61  ;;  %v1131_v30 = vld [vmem:[%s2088_s0 + $0x40] sm:$0xff] }
 0x1ff   :  { %v1127_v27 = vmul.f32 -1.442695, %v394_v60  ;;  %v352_v28 = vpop.f32.mrb[7].mxu0  ;;  %v1273_v29 = vpop.f32.mrb[7].mxu1  ;;  %v1130_v60 = vld [vmem:[%s2088_s0 + $0x38] sm:$0xff] }
 0x200   :  { %v1128_v32 = vmul.f32 -1.442695, %v401_v31 }
 0x201   :  { %1440 = vpow2.f32 %v1127_v27 }
 0x202   :  { %1442 = vpow2.f32 %v1128_v32 }
 0x20b   :  { %v1441_v33 = vpop.eup %1440 }
 0x20c   :  { %v398_v34 = vadd.f32 1.0, %v1441_v33  ;;  %v1443_v35 = vpop.eup %1442 }
 0x20d   :  { %v405_v41 = vadd.f32 1.0, %v1443_v35 }
 0x20e   :  { %1444 = vrcp.f32 %v398_v34 }
 0x218   :  { %v1445_v37 = vpop.eup %1444 }
 0x219   :  { %v409_v39 = vmul.f32 %v1445_v37, %v408_v36 }
 0x21b   :  { %v410_v40 = vadd.f32 %v1126_v38, %v409_v39 }
 0x21d   :  { %1446 = vtanh.f32 %v410_v40  ;;  %v1134_v40 = vld [vmem:[%s2088_s0 + $0x48] sm:$0xff] }
 0x21e   :  { %1448 = vrcp.f32 %v405_v41 }
 0x227   :  { %v1447_v42 = vpop.eup %1446 }
 0x228   :  { %v412_v44 = vsub.f32 %v1762_v55, %v1447_v42  ;;  %v1449_v45 = vpop.eup %1448 }
 0x22a   :  { %v413_v46 = vmul.f32 %v1449_v45, %v412_v44 }
 0x22c   :  { %v1812_v47 = vadd.f32 %v1447_v42, %v413_v46 }
 0x22e   :  { %v419_v48 = vpack.c.bf16 %v1812_v47, %v1812_v47 }
 0x230   :  { %453 = vmatmul.mubr.bf16.vlgmr.msra.gmra.mrb[8].mxu0 %v419_v48  ;;  %1291 = vmatmul.mubr.bf16.vlgmr.msra.gmra.mrb[8].mxu1 %v419_v48 }
 0x231   :  { %528 = vmatpush1.bf16.msra.mxu0 %v1565_v3  ;;  %1295 = vmatpush3.bf16.msra.mxu1 %v1602_v9 }
 0x232   :  { %529 = vmatprep.subr.bf16.mxu0 %v1573_v4  ;;  %1296 = vmatprep.subr.bf16.mxu1 %v1511_v1 }
 0x233   :  { %559 = vmatprep.mubr.bf16.mxu0 %v1512_v2  ;;  %1310 = vmatprep.mubr.msk.bf16.mxu1 %vm1513_vm0, %v1511_v1 }
 0x235   :  { %530 = vmatpush1.bf16.msra.mxu0 %v1579_v5  ;;  %1297 = vmatpush3.bf16.msra.mxu1 %v1621_v12 }
 0x236   :  { %531 = vmatprep.subr.bf16.mxu0 %v1585_v6  ;;  %1298 = vmatprep.subr.bf16.mxu1 %v1511_v1 }
 0x239   :  { %532 = vmatpush1.bf16.msra.mxu0 %v1591_v7  ;;  %1299 = vmatpush3.bf16.msra.mxu1 %v1633_v14 }
 0x23a   :  { %533 = vmatprep.subr.bf16.mxu0 %v1597_v8  ;;  %1300 = vmatprep.subr.bf16.mxu1 %v1511_v1 }
 0x23d   :  { %534 = vmatpush1.bf16.msra.mxu0 %v1608_v10  ;;  %1301 = vmatpush3.bf16.msra.mxu1 %v1652_v17 }
 0x23e   :  { %535 = vmatprep.subr.bf16.mxu0 %v1615_v11  ;;  %1302 = vmatprep.subr.bf16.mxu1 %v1511_v1 }
 0x241   :  { %536 = vmatpush1.bf16.msra.mxu0 %v1626_v13  ;;  %1303 = vmatpush3.bf16.msra.mxu1 %v1671_v20 }
 0x242   :  { %537 = vmatprep.subr.bf16.mxu0 %v1639_v15  ;;  %1304 = vmatprep.subr.bf16.mxu1 %v1511_v1 }
 0x245   :  { %538 = vmatpush1.bf16.msra.mxu0 %v1646_v16  ;;  %1305 = vmatpush3.bf16.msra.mxu1 %v1690_v23 }
 0x246   :  { %539 = vmatprep.subr.bf16.mxu0 %v1658_v18  ;;  %1306 = vmatprep.subr.bf16.mxu1 %v1511_v1 }
 0x249   :  { %540 = vmatpush1.bf16.msra.mxu0 %v1665_v19  ;;  %1307 = vmatpush3.bf16.msra.mxu1 %v1699_v24 }
 0x24a   :  { %541 = vmatprep.subr.bf16.mxu0 %v1677_v21  ;;  %1308 = vmatprep.subr.bf16.mxu1 %v1511_v1 }
 0x24d   :  { %542 = vmatpush1.bf16.msra.mxu0 %v1684_v22  ;;  %1309 = vmatpush3.bf16.msra.mxu1 %v1707_v26 }
 0x24e   :  { %634 = vmatprep.subr.bf16.mxu0 %v1558_v0  ;;  %1314 = vmatprep.subr.bf16.mxu1 %v1511_v1 }
 0x303   :  { %v454_v50 = vpop.f32.mrb[8].mxu0  ;;  %v495_v51 = vpop.f32.mrb[8].mxu1 }
 0x304   :  { %v501_v52 = vadd.f32 %v1129_v49, %v454_v50  ;;  %v456_v53 = vpop.f32.mrb[9].mxu0  ;;  %v1292_v54 = vpop.f32.mrb[9].mxu1  ;;  %v515_v28 = vadd.f32 %v1756_v43, %v495_v51 }
 0x305   :  { %v458_v55 = vpop.f32.mrb[10].mxu0  ;;  %v498_v56 = vpop.f32.mrb[10].mxu1  ;;  %v508_v61 = vadd.f32 %v1130_v60, %v456_v53  ;;  %v1136_v60 = vld [vmem:[%s2088_s0 + $0x58] sm:$0xff] }
 0x306   :  { %v1132_v57 = vmul.f32 -1.442695, %v501_v52  ;;  %v459_v58 = vpop.f32.mrb[11].mxu0  ;;  %v1293_v59 = vpop.f32.mrb[11].mxu1  ;;  %v1135_v52 = vld [vmem:[%s2088_s0 + $0x50] sm:$0xff] }
 0x307   :  { %v1133_v62 = vmul.f32 -1.442695, %v508_v61 }
 0x308   :  { %1450 = vpow2.f32 %v1132_v57 }
 0x309   :  { %1452 = vpow2.f32 %v1133_v62 }
 0x312   :  { %v1451_v63 = vpop.eup %1450 }
 0x313   :  { %v505_v25 = vadd.f32 1.0, %v1451_v63  ;;  %v1453_v27 = vpop.eup %1452 }
 0x314   :  { %v512_v33 = vadd.f32 1.0, %v1453_v27 }
 0x315   :  { %1454 = vrcp.f32 %v505_v25 }
 0x31f   :  { %v1455_v29 = vpop.eup %1454 }
 0x320   :  { %v516_v31 = vmul.f32 %v1455_v29, %v515_v28 }
 0x322   :  { %v517_v32 = vadd.f32 %v1131_v30, %v516_v31 }
 0x324   :  { %1456 = vtanh.f32 %v517_v32  ;;  %v1139_v32 = vld [vmem:[%s2088_s0 + $0x60] sm:$0xff] }
 0x325   :  { %1458 = vrcp.f32 %v512_v33 }
 0x32e   :  { %v1457_v34 = vpop.eup %1456 }
 0x32f   :  { %v519_v35 = vsub.f32 %v1812_v47, %v1457_v34  ;;  %v1459_v36 = vpop.eup %1458 }
 0x331   :  { %v520_v37 = vmul.f32 %v1459_v36, %v519_v35 }
 0x333   :  { %v1862_v38 = vadd.f32 %v1457_v34, %v520_v37 }
 0x335   :  { %v526_v39 = vpack.c.bf16 %v1862_v38, %v1862_v38 }
 0x337   :  { %560 = vmatmul.mubr.bf16.vlgmr.msra.gmra.mrb[12].mxu0 %v526_v39  ;;  %1311 = vmatmul.mubr.bf16.vlgmr.msra.gmra.mrb[12].mxu1 %v526_v39 }
 0x338   :  { %635 = vmatpush1.bf16.msra.mxu0 %v1565_v3  ;;  %1315 = vmatpush3.bf16.msra.mxu1 %v1602_v9 }
 0x339   :  { %636 = vmatprep.subr.bf16.mxu0 %v1573_v4  ;;  %1316 = vmatprep.subr.bf16.mxu1 %v1511_v1 }
 0x33a   :  { %666 = vmatprep.mubr.bf16.mxu0 %v1512_v2  ;;  %1330 = vmatprep.mubr.msk.bf16.mxu1 %vm1513_vm0, %v1511_v1 }
 0x33c   :  { %637 = vmatpush1.bf16.msra.mxu0 %v1579_v5  ;;  %1317 = vmatpush3.bf16.msra.mxu1 %v1621_v12 }
 0x33d   :  { %638 = vmatprep.subr.bf16.mxu0 %v1585_v6  ;;  %1318 = vmatprep.subr.bf16.mxu1 %v1511_v1 }
 0x340   :  { %639 = vmatpush1.bf16.msra.mxu0 %v1591_v7  ;;  %1319 = vmatpush3.bf16.msra.mxu1 %v1633_v14 }
 0x341   :  { %640 = vmatprep.subr.bf16.mxu0 %v1597_v8  ;;  %1320 = vmatprep.subr.bf16.mxu1 %v1511_v1 }
 0x344   :  { %641 = vmatpush1.bf16.msra.mxu0 %v1608_v10  ;;  %1321 = vmatpush3.bf16.msra.mxu1 %v1652_v17 }
 0x345   :  { %642 = vmatprep.subr.bf16.mxu0 %v1615_v11  ;;  %1322 = vmatprep.subr.bf16.mxu1 %v1511_v1 }
 0x348   :  { %643 = vmatpush1.bf16.msra.mxu0 %v1626_v13  ;;  %1323 = vmatpush3.bf16.msra.mxu1 %v1671_v20 }
 0x349   :  { %644 = vmatprep.subr.bf16.mxu0 %v1639_v15  ;;  %1324 = vmatprep.subr.bf16.mxu1 %v1511_v1 }
 0x34c   :  { %645 = vmatpush1.bf16.msra.mxu0 %v1646_v16  ;;  %1325 = vmatpush3.bf16.msra.mxu1 %v1690_v23 }
 0x34d   :  { %646 = vmatprep.subr.bf16.mxu0 %v1658_v18  ;;  %1326 = vmatprep.subr.bf16.mxu1 %v1511_v1 }
 0x350   :  { %647 = vmatpush1.bf16.msra.mxu0 %v1665_v19  ;;  %1327 = vmatpush3.bf16.msra.mxu1 %v1699_v24 }
 0x351   :  { %648 = vmatprep.subr.bf16.mxu0 %v1677_v21  ;;  %1328 = vmatprep.subr.bf16.mxu1 %v1511_v1 }
 0x354   :  { %649 = vmatpush1.bf16.msra.mxu0 %v1684_v22  ;;  %1329 = vmatpush3.bf16.msra.mxu1 %v1707_v26 }
 0x355   :  { %741 = vmatprep.subr.bf16.mxu0 %v1558_v0  ;;  %1334 = vmatprep.subr.bf16.mxu1 %v1511_v1 }
 0x40a   :  { %v561_v41 = vpop.f32.mrb[12].mxu0  ;;  %v602_v42 = vpop.f32.mrb[12].mxu1 }
 0x40b   :  { %v608_v44 = vadd.f32 %v1134_v40, %v561_v41  ;;  %v563_v45 = vpop.f32.mrb[13].mxu0  ;;  %v1312_v46 = vpop.f32.mrb[13].mxu1  ;;  %v622_v58 = vadd.f32 %v1756_v43, %v602_v42 }
 0x40c   :  { %v565_v47 = vpop.f32.mrb[14].mxu0  ;;  %v605_v48 = vpop.f32.mrb[14].mxu1  ;;  %v615_v53 = vadd.f32 %v1135_v52, %v563_v45  ;;  %v1141_v52 = vld [vmem:[%s2088_s0 + $0x70] sm:$0xff] }
 0x40d   :  { %v1137_v49 = vmul.f32 -1.442695, %v608_v44  ;;  %v566_v50 = vpop.f32.mrb[15].mxu0  ;;  %v1313_v51 = vpop.f32.mrb[15].mxu1  ;;  %v1140_v44 = vld [vmem:[%s2088_s0 + $0x68] sm:$0xff] }
 0x40e   :  { %v1138_v54 = vmul.f32 -1.442695, %v615_v53 }
 0x40f   :  { %1460 = vpow2.f32 %v1137_v49 }
 0x410   :  { %1462 = vpow2.f32 %v1138_v54 }
 0x419   :  { %v1461_v55 = vpop.eup %1460 }
 0x41a   :  { %v612_v56 = vadd.f32 1.0, %v1461_v55  ;;  %v1463_v57 = vpop.eup %1462 }
 0x41b   :  { %v619_v63 = vadd.f32 1.0, %v1463_v57 }
 0x41c   :  { %1464 = vrcp.f32 %v612_v56 }
 0x426   :  { %v1465_v59 = vpop.eup %1464 }
 0x427   :  { %v623_v61 = vmul.f32 %v1465_v59, %v622_v58 }
 0x429   :  { %v624_v62 = vadd.f32 %v1136_v60, %v623_v61 }
 0x42b   :  { %1466 = vtanh.f32 %v624_v62 }
 0x42c   :  { %1468 = vrcp.f32 %v619_v63 }
 0x435   :  { %v1467_v25 = vpop.eup %1466 }
 0x436   :  { %v626_v27 = vsub.f32 %v1862_v38, %v1467_v25  ;;  %v1469_v28 = vpop.eup %1468 }
 0x438   :  { %v627_v29 = vmul.f32 %v1469_v28, %v626_v27 }
 0x43a   :  { %v1912_v30 = vadd.f32 %v1467_v25, %v627_v29 }
 0x43c   :  { %v633_v31 = vpack.c.bf16 %v1912_v30, %v1912_v30 }
 0x43e   :  { %667 = vmatmul.mubr.bf16.vlgmr.msra.gmra.mrb[16].mxu0 %v633_v31  ;;  %1331 = vmatmul.mubr.bf16.vlgmr.msra.gmra.mrb[16].mxu1 %v633_v31 }
 0x43f   :  { %742 = vmatpush1.bf16.msra.mxu0 %v1565_v3  ;;  %1335 = vmatpush3.bf16.msra.mxu1 %v1602_v9 }
 0x440   :  { %743 = vmatprep.subr.bf16.mxu0 %v1573_v4  ;;  %1336 = vmatprep.subr.bf16.mxu1 %v1511_v1 }
 0x441   :  { %773 = vmatprep.mubr.bf16.mxu0 %v1512_v2  ;;  %1350 = vmatprep.mubr.msk.bf16.mxu1 %vm1513_vm0, %v1511_v1 }
 0x443   :  { %744 = vmatpush1.bf16.msra.mxu0 %v1579_v5  ;;  %1337 = vmatpush3.bf16.msra.mxu1 %v1621_v12 }
 0x444   :  { %745 = vmatprep.subr.bf16.mxu0 %v1585_v6  ;;  %1338 = vmatprep.subr.bf16.mxu1 %v1511_v1 }
 0x447   :  { %746 = vmatpush1.bf16.msra.mxu0 %v1591_v7  ;;  %1339 = vmatpush3.bf16.msra.mxu1 %v1633_v14 }
 0x448   :  { %747 = vmatprep.subr.bf16.mxu0 %v1597_v8  ;;  %1340 = vmatprep.subr.bf16.mxu1 %v1511_v1 }
 0x44b   :  { %748 = vmatpush1.bf16.msra.mxu0 %v1608_v10  ;;  %1341 = vmatpush3.bf16.msra.mxu1 %v1652_v17 }
 0x44c   :  { %749 = vmatprep.subr.bf16.mxu0 %v1615_v11  ;;  %1342 = vmatprep.subr.bf16.mxu1 %v1511_v1 }
 0x44f   :  { %750 = vmatpush1.bf16.msra.mxu0 %v1626_v13  ;;  %1343 = vmatpush3.bf16.msra.mxu1 %v1671_v20 }
 0x450   :  { %751 = vmatprep.subr.bf16.mxu0 %v1639_v15  ;;  %1344 = vmatprep.subr.bf16.mxu1 %v1511_v1 }
 0x453   :  { %752 = vmatpush1.bf16.msra.mxu0 %v1646_v16  ;;  %1345 = vmatpush3.bf16.msra.mxu1 %v1690_v23 }
 0x454   :  { %753 = vmatprep.subr.bf16.mxu0 %v1658_v18  ;;  %1346 = vmatprep.subr.bf16.mxu1 %v1511_v1 }
 0x457   :  { %754 = vmatpush1.bf16.msra.mxu0 %v1665_v19  ;;  %1347 = vmatpush3.bf16.msra.mxu1 %v1699_v24 }
 0x458   :  { %755 = vmatprep.subr.bf16.mxu0 %v1677_v21  ;;  %1348 = vmatprep.subr.bf16.mxu1 %v1511_v1 }
 0x45b   :  { %756 = vmatpush1.bf16.msra.mxu0 %v1684_v22  ;;  %1349 = vmatpush3.bf16.msra.mxu1 %v1707_v26 }
 0x45c   :  { %848 = vmatprep.subr.bf16.mxu0 %v1558_v0  ;;  %1354 = vmatprep.subr.bf16.mxu1 %v1511_v1 }
 0x511   :  { %v668_v33 = vpop.f32.mrb[16].mxu0  ;;  %v709_v34 = vpop.f32.mrb[16].mxu1 }
 0x512   :  { %v715_v35 = vadd.f32 %v1139_v32, %v668_v33  ;;  %v670_v36 = vpop.f32.mrb[17].mxu0  ;;  %v1332_v37 = vpop.f32.mrb[17].mxu1  ;;  %v729_v50 = vadd.f32 %v1756_v43, %v709_v34 }
 0x513   :  { %v672_v38 = vpop.f32.mrb[18].mxu0  ;;  %v712_v39 = vpop.f32.mrb[18].mxu1  ;;  %v722_v45 = vadd.f32 %v1140_v44, %v670_v36 }
 0x514   :  { %v1142_v40 = vmul.f32 -1.442695, %v715_v35  ;;  %v673_v41 = vpop.f32.mrb[19].mxu0  ;;  %v1333_v42 = vpop.f32.mrb[19].mxu1 }
 0x515   :  { %v1143_v46 = vmul.f32 -1.442695, %v722_v45  ;;  %v1146_v41 = vld [vmem:[%s2088_s0 + $0x88] sm:$0xff] }
 0x516   :  { %1470 = vpow2.f32 %v1142_v40 }
 0x517   :  { %1472 = vpow2.f32 %v1143_v46 }
 0x520   :  { %v1471_v47 = vpop.eup %1470 }
 0x521   :  { %v719_v48 = vadd.f32 1.0, %v1471_v47  ;;  %v1473_v49 = vpop.eup %1472 }
 0x522   :  { %v726_v55 = vadd.f32 1.0, %v1473_v49 }
 0x523   :  { %1474 = vrcp.f32 %v719_v48 }
 0x52d   :  { %v1475_v51 = vpop.eup %1474 }
 0x52e   :  { %v730_v53 = vmul.f32 %v1475_v51, %v729_v50 }
 0x530   :  { %v731_v54 = vadd.f32 %v1141_v52, %v730_v53  ;;  %v1510_v52 = vld [vmem:[%s2087_s1] ss:$12 sps:$4 sm:$0xff]  }
 0x532   :  { %1476 = vtanh.f32 %v731_v54 }
 0x533   :  { %1478 = vrcp.f32 %v726_v55 }
 0x53c   :  { %v1477_v56 = vpop.eup %1476 }
 0x53d   :  { %v733_v57 = vsub.f32 %v1912_v30, %v1477_v56  ;;  %v1479_v58 = vpop.eup %1478 }
 0x53f   :  { %v734_v59 = vmul.f32 %v1479_v58, %v733_v57  ;;  %v1154_v58 = vld [vmem:[%s2088_s0 + $0xa8] sm:$0xff] }
 0x541   :  { %v1962_v60 = vadd.f32 %v1477_v56, %v734_v59 }
 0x543   :  { %v740_v61 = vpack.c.bf16 %v1962_v60, %v1962_v60 }
 0x545   :  { %774 = vmatmul.mubr.bf16.vlgmr.msra.gmra.mrb[20].mxu0 %v740_v61  ;;  %1351 = vmatmul.mubr.bf16.vlgmr.msra.gmra.mrb[20].mxu1 %v740_v61 }
 0x546   :  { %849 = vmatpush1.bf16.msra.mxu0 %v1565_v3  ;;  %1355 = vmatpush3.bf16.msra.mxu1 %v1602_v9  ;;  %v1144_v3 = vld [vmem:[%s2088_s0 + $0x78] sm:$0xff] }
 0x547   :  { %850 = vmatprep.subr.bf16.mxu0 %v1573_v4  ;;  %1356 = vmatprep.subr.bf16.mxu1 %v1511_v1 }
 0x548   :  { %880 = vmatprep.mubr.bf16.mxu0 %v1512_v2  ;;  %1370 = vmatprep.mubr.msk.bf16.mxu1 %vm1513_vm0, %v1511_v1 }
 0x54a   :  { %851 = vmatpush1.bf16.msra.mxu0 %v1579_v5  ;;  %1357 = vmatpush3.bf16.msra.mxu1 %v1621_v12 }
 0x54b   :  { %852 = vmatprep.subr.bf16.mxu0 %v1585_v6  ;;  %1358 = vmatprep.subr.bf16.mxu1 %v1511_v1 }
 0x54e   :  { %853 = vmatpush1.bf16.msra.mxu0 %v1591_v7  ;;  %1359 = vmatpush3.bf16.msra.mxu1 %v1633_v14 }
 0x54f   :  { %854 = vmatprep.subr.bf16.mxu0 %v1597_v8  ;;  %1360 = vmatprep.subr.bf16.mxu1 %v1511_v1 }
 0x552   :  { %855 = vmatpush1.bf16.msra.mxu0 %v1608_v10  ;;  %1361 = vmatpush3.bf16.msra.mxu1 %v1652_v17 }
 0x553   :  { %856 = vmatprep.subr.bf16.mxu0 %v1615_v11  ;;  %1362 = vmatprep.subr.bf16.mxu1 %v1511_v1 }
 0x556   :  { %857 = vmatpush1.bf16.msra.mxu0 %v1626_v13  ;;  %1363 = vmatpush3.bf16.msra.mxu1 %v1671_v20 }
 0x557   :  { %858 = vmatprep.subr.bf16.mxu0 %v1639_v15  ;;  %1364 = vmatprep.subr.bf16.mxu1 %v1511_v1 }
 0x55a   :  { %859 = vmatpush1.bf16.msra.mxu0 %v1646_v16  ;;  %1365 = vmatpush3.bf16.msra.mxu1 %v1690_v23 }
 0x55b   :  { %860 = vmatprep.subr.bf16.mxu0 %v1658_v18  ;;  %1366 = vmatprep.subr.bf16.mxu1 %v1511_v1 }
 0x55e   :  { %861 = vmatpush1.bf16.msra.mxu0 %v1665_v19  ;;  %1367 = vmatpush3.bf16.msra.mxu1 %v1699_v24 }
 0x55f   :  { %862 = vmatprep.subr.bf16.mxu0 %v1677_v21  ;;  %1368 = vmatprep.subr.bf16.mxu1 %v1511_v1 }
 0x562   :  { %863 = vmatpush1.bf16.msra.mxu0 %v1684_v22  ;;  %1369 = vmatpush3.bf16.msra.mxu1 %v1707_v26 }
 0x563   :  { %955 = vmatprep.subr.bf16.mxu0 %v1558_v0  ;;  %1374 = vmatprep.subr.bf16.mxu1 %v1511_v1  ;;  %v1145_v0 = vld [vmem:[%s2088_s0 + $0x80] sm:$0xff] }
 0x618   :  { %v775_v62 = vpop.f32.mrb[20].mxu0  ;;  %v816_v63 = vpop.f32.mrb[20].mxu1 }
 0x619   :  { %v822_v25 = vadd.f32 %v1144_v3, %v775_v62  ;;  %v777_v27 = vpop.f32.mrb[21].mxu0  ;;  %v1352_v28 = vpop.f32.mrb[21].mxu1  ;;  %v836_v39 = vadd.f32 %v1756_v43, %v816_v63 }
 0x61a   :  { %v779_v29 = vpop.f32.mrb[22].mxu0  ;;  %v819_v30 = vpop.f32.mrb[22].mxu1  ;;  %v829_v34 = vadd.f32 %v1145_v0, %v777_v27 }
 0x61b   :  { %v1147_v31 = vmul.f32 -1.442695, %v822_v25  ;;  %v780_v32 = vpop.f32.mrb[23].mxu0  ;;  %v1353_v33 = vpop.f32.mrb[23].mxu1  ;;  %v1155_v30 = vld [vmem:[%s2088_s0 + $0xb0] sm:$0xff] }
 0x61c   :  { %v1148_v35 = vmul.f32 -1.442695, %v829_v34 }
 0x61d   :  { %1480 = vpow2.f32 %v1147_v31 }
 0x61e   :  { %1482 = vpow2.f32 %v1148_v35 }
 0x627   :  { %v1481_v36 = vpop.eup %1480 }
 0x628   :  { %v826_v37 = vadd.f32 1.0, %v1481_v36  ;;  %v1483_v38 = vpop.eup %1482 }
 0x629   :  { %v833_v45 = vadd.f32 1.0, %v1483_v38 }
 0x62a   :  { %1484 = vrcp.f32 %v826_v37  ;;  %v1156_v37 = vld [vmem:[%s2088_s0 + $0xb8] sm:$0xff] }
 0x634   :  { %v1485_v40 = vpop.eup %1484 }
 0x635   :  { %v837_v42 = vmul.f32 %v1485_v40, %v836_v39 }
 0x637   :  { %v838_v44 = vadd.f32 %v1146_v41, %v837_v42 }
 0x639   :  { %1486 = vtanh.f32 %v838_v44 }
 0x63a   :  { %1488 = vrcp.f32 %v833_v45 }
 0x643   :  { %v1487_v46 = vpop.eup %1486 }
 0x644   :  { %v840_v47 = vsub.f32 %v1962_v60, %v1487_v46  ;;  %v1489_v48 = vpop.eup %1488 }
 0x646   :  { %v841_v49 = vmul.f32 %v1489_v48, %v840_v47  ;;  %v1160_v48 = vld [vmem:[%s2092_s5] ss:$0 sm:$0xff] }
 0x648   :  { %v2012_v50 = vadd.f32 %v1487_v46, %v841_v49  ;;  %v1159_v46 = vld [vmem:[%s2090_s4] ss:$0 sm:$0xff] }
 0x64a   :  { %v847_v51 = vpack.c.bf16 %v2012_v50, %v2012_v50 }
 0x64c   :  { %881 = vmatmul.mubr.bf16.vlgmr.msra.gmra.mrb[24].mxu0 %v847_v51  ;;  %1371 = vmatmul.mubr.bf16.vlgmr.msra.gmra.mrb[24].mxu1 %v847_v51  ;;  %v12_v51 = vstv %s2093_s6 }
 0x64d   :  { %956 = vmatpush1.bf16.msra.mxu0 %v1510_v52  ;;  %1375 = vmatpush3.bf16.msra.mxu1 %v1602_v9  ;;  %13 = vst [vmem:[#allocation3] sm:$0x1] %v12_v51 }
 0x64e   :  { %957 = vmatprep.subr.bf16.mxu0 %v1573_v4  ;;  %1376 = vmatprep.subr.bf16.mxu1 %v1511_v1 }
 0x64f   :  { %987 = vmatprep.mubr.bf16.mxu0 %v1512_v2  ;;  %1390 = vmatprep.mubr.msk.bf16.mxu1 %vm1513_vm0, %v1511_v1  ;;  %v1149_v2 = vld [vmem:[%s2088_s0 + $0x90] sm:$0xff] }
 0x651   :  { %958 = vmatpush1.bf16.msra.mxu0 %v1579_v5  ;;  %1377 = vmatpush3.bf16.msra.mxu1 %v1621_v12 }
 0x652   :  { %959 = vmatprep.subr.bf16.mxu0 %v1585_v6  ;;  %1378 = vmatprep.subr.bf16.mxu1 %v1511_v1 }
 0x655   :  { %960 = vmatpush1.bf16.msra.mxu0 %v1591_v7  ;;  %1379 = vmatpush3.bf16.msra.mxu1 %v1633_v14 }
 0x656   :  { %961 = vmatprep.subr.bf16.mxu0 %v1597_v8  ;;  %1380 = vmatprep.subr.bf16.mxu1 %v1511_v1 }
 0x659   :  { %962 = vmatpush1.bf16.msra.mxu0 %v1608_v10  ;;  %1381 = vmatpush3.bf16.msra.mxu1 %v1652_v17 }
 0x65a   :  { %963 = vmatprep.subr.bf16.mxu0 %v1615_v11  ;;  %1382 = vmatprep.subr.bf16.mxu1 %v1511_v1 }
 0x65d   :  { %964 = vmatpush1.bf16.msra.mxu0 %v1626_v13  ;;  %1383 = vmatpush3.bf16.msra.mxu1 %v1671_v20 }
 0x65e   :  { %965 = vmatprep.subr.bf16.mxu0 %v1639_v15  ;;  %1384 = vmatprep.subr.bf16.mxu1 %v1511_v1 }
 0x661   :  { %966 = vmatpush1.bf16.msra.mxu0 %v1646_v16  ;;  %1385 = vmatpush3.bf16.msra.mxu1 %v1690_v23 }
 0x662   :  { %967 = vmatprep.subr.bf16.mxu0 %v1658_v18  ;;  %1386 = vmatprep.subr.bf16.mxu1 %v1511_v1 }
 0x665   :  { %968 = vmatpush1.bf16.msra.mxu0 %v1665_v19  ;;  %1387 = vmatpush3.bf16.msra.mxu1 %v1699_v24 }
 0x666   :  { %969 = vmatprep.subr.bf16.mxu0 %v1677_v21  ;;  %1388 = vmatprep.subr.bf16.mxu1 %v1511_v1  ;;  %v1150_v1 = vld [vmem:[%s2088_s0 + $0x98] sm:$0xff]  ;;  %v1151_v21 = vld [vmem:[%s2088_s0 + $0xa0] sm:$0xff] }
 0x669   :  { %970 = vmatpush1.bf16.msra.mxu0 %v1684_v22  ;;  %1389 = vmatpush3.bf16.msra.mxu1 %v1707_v26 }
 0x71f   :  { %v882_v4 = vpop.f32.mrb[24].mxu0  ;;  %v923_v5 = vpop.f32.mrb[24].mxu1 }
 0x720   :  { %v929_v6 = vadd.f32 %v1149_v2, %v882_v4  ;;  %v884_v7 = vpop.f32.mrb[25].mxu0  ;;  %v1372_v8 = vpop.f32.mrb[25].mxu1  ;;  %v943_v19 = vadd.f32 %v1756_v43, %v923_v5  ;;  %v1161_v2 = vld [vmem:[#allocation3] ss:$0 sm:$0xff] }
 0x721   :  { %v886_v9 = vpop.f32.mrb[26].mxu0  ;;  %v926_v10 = vpop.f32.mrb[26].mxu1  ;;  %v936_v14 = vadd.f32 %v1150_v1, %v884_v7 }
 0x722   :  { %v1152_v11 = vmul.f32 -1.442695, %v929_v6  ;;  %v887_v12 = vpop.f32.mrb[27].mxu0  ;;  %v1373_v13 = vpop.f32.mrb[27].mxu1 }
 0x723   :  { %v1153_v15 = vmul.f32 -1.442695, %v936_v14 }
 0x724   :  { %1490 = vpow2.f32 %v1152_v11 }
 0x725   :  { %1492 = vpow2.f32 %v1153_v15 }
 0x72e   :  { %v1491_v16 = vpop.eup %1490 }
 0x72f   :  { %v933_v17 = vadd.f32 1.0, %v1491_v16  ;;  %v1493_v18 = vpop.eup %1492 }
 0x730   :  { %v940_v24 = vadd.f32 1.0, %v1493_v18 }
 0x731   :  { %1494 = vrcp.f32 %v933_v17 }
 0x73b   :  { %v1495_v20 = vpop.eup %1494 }
 0x73c   :  { %v944_v22 = vmul.f32 %v1495_v20, %v943_v19 }
 0x73e   :  { %v945_v23 = vadd.f32 %v1151_v21, %v944_v22 }
 0x740   :  { %1496 = vtanh.f32 %v945_v23 }
 0x741   :  { %1498 = vrcp.f32 %v940_v24 }
 0x74a   :  { %v1497_v26 = vpop.eup %1496 }
 0x74b   :  { %v947_v53 = vsub.f32 %v2012_v50, %v1497_v26  ;;  %v1499_v54 = vpop.eup %1498 }
 0x74d   :  { %v948_v55 = vmul.f32 %v1499_v54, %v947_v53 }
 0x74f   :  { %v949_v56 = vadd.f32 %v1497_v26, %v948_v55 }
 0x751   :  { %v954_v57 = vpack.c.bf16 %v949_v56, %v949_v56 }
 0x753   :  { %988 = vmatmul.mubr.bf16.vlgmr.msra.gmra.mrb[28].mxu0 %v954_v57  ;;  %1391 = vmatmul.mubr.bf16.vlgmr.msra.gmra.mrb[28].mxu1 %v954_v57 }
 0x826   :  { %v989_v59 = vpop.f32.mrb[28].mxu0  ;;  %v1030_v60 = vpop.f32.mrb[28].mxu1 }
 0x827   :  { %v1036_v61 = vadd.f32 %v1154_v58, %v989_v59  ;;  %v991_v3 = vpop.f32.mrb[29].mxu0  ;;  %v1392_v62 = vpop.f32.mrb[29].mxu1  ;;  %v1050_v35 = vadd.f32 %v1756_v43, %v1030_v60  ;;  %v1071_v43 = vld [vmem:[%s2091_s3] sm:$0xff] }
 0x828   :  { %v993_v63 = vpop.f32.mrb[30].mxu0  ;;  %v1033_v25 = vpop.f32.mrb[30].mxu1  ;;  %v1043_v31 = vadd.f32 %v1155_v30, %v991_v3  ;;  %v1079_v50 = vmul.f32 %v1160_v48, %v1071_v43 }
 0x829   :  { %v1157_v27 = vmul.f32 -1.442695, %v1036_v61  ;;  %v994_v28 = vpop.f32.mrb[31].mxu0  ;;  %v1393_v29 = vpop.f32.mrb[31].mxu1 }
 0x82a   :  { %v1158_v32 = vmul.f32 -1.442695, %v1043_v31 }
 0x82b   :  { %1500 = vpow2.f32 %v1157_v27 }
 0x82c   :  { %1502 = vpow2.f32 %v1158_v32 }
 0x835   :  { %v1501_v33 = vpop.eup %1500 }
 0x836   :  { %v1040_v0 = vadd.f32 1.0, %v1501_v33  ;;  %v1503_v34 = vpop.eup %1502 }
 0x837   :  { %v1047_v40 = vadd.f32 1.0, %v1503_v34 }
 0x838   :  { %1504 = vrcp.f32 %v1040_v0 }
 0x842   :  { %v1505_v36 = vpop.eup %1504 }
 0x843   :  { %v1051_v38 = vmul.f32 %v1505_v36, %v1050_v35 }
 0x845   :  { %v1052_v39 = vadd.f32 %v1156_v37, %v1051_v38 }
 0x847   :  { %1506 = vtanh.f32 %v1052_v39 }
 0x848   :  { %1508 = vrcp.f32 %v1047_v40 }
 0x851   :  { %v1507_v41 = vpop.eup %1506 }
 0x852   :  { %v1054_v42 = vsub.f32 %v949_v56, %v1507_v41  ;;  %v1509_v44 = vpop.eup %1508 }
 0x854   :  { %v1055_v45 = vmul.f32 %v1509_v44, %v1054_v42 }
 0x856   :  { %v1056_v47 = vadd.f32 %v1507_v41, %v1055_v45 }
 0x858   :  { %v1068_v49 = vmul.f32 %v1159_v46, %v1056_v47 }
 0x85a   :  { %1069 = vadd.xlane.f32.xlu0 %v1068_v49 }
 0x85e   :  { %1080 = vadd.xlane.f32.xlu0 %v1079_v50 }
 0x8e7   :  { %v1070_v52 = vpop.xlane.xlu0 %1069 }
 0x8eb   :  { %v1081_v4 = vpop.xlane.xlu0 %1080 }
 0x8ec   :  { %v1082_v5 = vadd.f32 %v1081_v4, %v1070_v52 }
 0x8ee   :  { %v1090_v6 = vadd.f32 %v1161_v2, %v1082_v5 }
 0x8f0   :  { %1092 = vst.msk [vmem:[%s2094_s7] sm:$0xff] %vm1091_vm1, %v1090_v6 }

</bundles_post_ra>
